<compile_context>
chip_gen: v5e
topology: v5e:2x2
jax: 0.10.0
libtpu: 0.0.40
codegen_flags: <defaults>
</compile_context>

<pallas_src>
import functools

import jax
import jax.numpy as jnp
from jax.experimental import pallas as pl
from jax.experimental.pallas import tpu as pltpu


# ---------------------------------------------------------------------------
# Generation-aware configuration
# ---------------------------------------------------------------------------

def _tpu_vmem_capacity_bytes():
    try:
        info = pltpu.get_tpu_info()
        cap = getattr(info, "vmem_capacity_bytes", None)
        if cap:
            return int(cap)
    except Exception:
        pass
    return 64 * 1024 * 1024          # conservative default (v7x per-TC VMEM)


_VMEM_CAP = _tpu_vmem_capacity_bytes()
if _VMEM_CAP >= 100 * 1024 * 1024:   # v5e / v6e: 128 MiB physical VMEM
    _VMEM_LIMIT = 96 * 1024 * 1024
    _ROW_TILE_TARGET = 512
else:                                # v7x: 64 MiB physical per TensorCore
    _VMEM_LIMIT = 48 * 1024 * 1024
    _ROW_TILE_TARGET = 256


def _pick_row_tile(m, target):
    """Largest row tile <= target that divides m and is a multiple of 8."""
    if m <= target:
        return m
    t = (target // 8) * 8
    while t >= 8:
        if m % t == 0:
            return t
        t -= 8
    return m      # no multiple-of-8 divisor: fall back to one full block


def _pick_ff_tile(dff, target):
    """Largest dff tile <= target that divides dff and is a multiple of 128."""
    if dff <= target:
        return dff
    t = (target // 128) * 128
    while t >= 128:
        if dff % t == 0:
            return t
        t -= 128
    return dff


# ---------------------------------------------------------------------------
# Single-buffering of grid-invariant operands (probed once; falls back cleanly)
# ---------------------------------------------------------------------------

def _probe_kernel(w_ref, x_ref, o_ref):
    o_ref[...] = x_ref[...] + w_ref[...]


@functools.lru_cache(maxsize=None)
def _single_buffer_ok():
    """True iff this JAX/Mosaic build accepts pipeline_mode=pl.Buffered(1)."""
    try:
        w = jnp.zeros((8, 128), jnp.float32)
        x = jnp.zeros((16, 128), jnp.float32)
        out = pl.pallas_call(
            _probe_kernel,
            out_shape=jax.ShapeDtypeStruct((16, 128), jnp.float32),
            grid=(2,),
            in_specs=[
                pl.BlockSpec((8, 128), lambda i: (0, 0),
                             pipeline_mode=pl.Buffered(1)),
                pl.BlockSpec((8, 128), lambda i: (i, 0)),
            ],
            out_specs=pl.BlockSpec((8, 128), lambda i: (i, 0)),
        )(w, x)
        jax.block_until_ready(out)
        return True
    except Exception:
        return False


def _const_spec(block_shape):
    """BlockSpec for a grid-invariant operand (weights / biases / LN params).

    Single-buffered (pl.Buffered(1)) when supported: these blocks never change
    across the grid, so double-buffering only doubles their VMEM footprint.
    """
    ndim = len(block_shape)
    index_map = lambda *_: (0,) * ndim
    if _single_buffer_ok():
        return pl.BlockSpec(block_shape, index_map, pipeline_mode=pl.Buffered(1))
    return pl.BlockSpec(block_shape, index_map)


# ---------------------------------------------------------------------------
# Shared LayerNorm helper (f32 statistics)
# ---------------------------------------------------------------------------

def _layernorm(y, gamma, beta, eps):
    mean = jnp.mean(y, axis=-1, keepdims=True)
    var = jnp.mean((y - mean) ** 2, axis=-1, keepdims=True)
    return (y - mean) * jax.lax.rsqrt(var + eps) * gamma + beta


# ---------------------------------------------------------------------------
# Fused attention block:  LN1(x + OutProj(MHA(x)))      grid = (B, S // tq)
# ---------------------------------------------------------------------------

def _attn_block_kernel(xq_ref, xkv_ref, wq_ref, bq_ref, wk_ref, bk_ref,
                       wv_ref, bv_ref, wo_ref, bo_ref, g_ref, beta_ref,
                       o_ref, k_sc, v_sc, attn_sc, *, nhead, eps):
    qi = pl.program_id(1)
    E = xq_ref.shape[-1]
    dh = E // nhead

    # K / V projection once per batch element; reused by every q-tile.
    @pl.when(qi == 0)
    def _():
        xs = xkv_ref[...]                                           # (S, E) bf16
        k_sc[...] = (jnp.dot(xs, wk_ref[...],
                             preferred_element_type=jnp.float32)
                     + bk_ref[...]).astype(jnp.bfloat16)
        v_sc[...] = (jnp.dot(xs, wv_ref[...],
                             preferred_element_type=jnp.float32)
                     + bv_ref[...]).astype(jnp.bfloat16)

    xq = xq_ref[...]                                                # (tq, E) bf16
    # q-scale (dh**-0.5) is pre-folded into wq / bq at parameter build time.
    q = jnp.dot(xq, wq_ref[...],
                preferred_element_type=jnp.float32) + bq_ref[...]   # (tq, E) f32
    k = k_sc[...]                                                   # (S, E) bf16
    v = v_sc[...]

    # Static unroll over heads; each head writes into the VMEM scratch slab
    # (no jnp.concatenate, one head's working set live at a time).
    for h in range(nhead):
        lo = h * dh
        qh = q[:, lo:lo + dh].astype(jnp.bfloat16)
        kh = k[:, lo:lo + dh]
        vh = v[:, lo:lo + dh]
        s = jax.lax.dot_general(qh, kh, (((1,), (1,)), ((), ())),
                                preferred_element_type=jnp.float32)  # (tq, S)
        s = s - jnp.max(s, axis=-1, keepdims=True)                   # f32 stats
        p = jnp.exp(s)
        p = p * pl.reciprocal(jnp.sum(p, axis=-1, keepdims=True), approx=True)
        attn_sc[:, lo:lo + dh] = jnp.dot(p.astype(jnp.bfloat16), vh,
                                         preferred_element_type=jnp.float32)

    proj = jnp.dot(attn_sc[...].astype(jnp.bfloat16), wo_ref[...],
                   preferred_element_type=jnp.float32) + bo_ref[...]
    y = xq.astype(jnp.float32) + proj
    o_ref[...] = _layernorm(y, g_ref[...], beta_ref[...], eps).astype(o_ref.dtype)


def attention_block(x, p, nhead, eps=1e-5):
    """x: (B, S, E) bf16  ->  LayerNorm1(x + SelfAttention(x)) : (B, S, E) bf16."""
    B, S, E = x.shape
    tq = _pick_row_tile(S, _ROW_TILE_TARGET)

    flops = B * (8 * S * E * E + 4 * S * S * E)
    bytes_accessed = 3 * B * S * E * 2 + 4 * E * E * 2 + 8 * E * 4
    cost = pl.CostEstimate(flops=int(flops),
                           transcendentals=int(B * nhead * S * S + B * S),
                           bytes_accessed=int(bytes_accessed))

    return pl.pallas_call(
        functools.partial(_attn_block_kernel, nhead=nhead, eps=eps),
        out_shape=jax.ShapeDtypeStruct((B, S, E), jnp.bfloat16),
        grid=(B, S // tq),
        in_specs=[
            pl.BlockSpec((None, tq, E), lambda b, qi: (b, qi, 0)),   # x (q rows)
            pl.BlockSpec((None, S, E), lambda b, qi: (b, 0, 0)),     # x (full seq, K/V)
            _const_spec((E, E)),      # W_q (bf16, scale folded)
            _const_spec((1, E)),      # b_q
            _const_spec((E, E)),      # W_k
            _const_spec((1, E)),      # b_k
            _const_spec((E, E)),      # W_v
            _const_spec((1, E)),      # b_v
            _const_spec((E, E)),      # W_out
            _const_spec((1, E)),      # b_out
            _const_spec((1, E)),      # ln1 gamma
            _const_spec((1, E)),      # ln1 beta
        ],
        out_specs=pl.BlockSpec((None, tq, E), lambda b, qi: (b, qi, 0)),
        scratch_shapes=[
            pltpu.VMEM((S, E), jnp.bfloat16),    # K cache (per batch element)
            pltpu.VMEM((S, E), jnp.bfloat16),    # V cache
            pltpu.VMEM((tq, E), jnp.float32),    # per-head output slab
        ],
        compiler_params=pltpu.CompilerParams(
            dimension_semantics=("parallel", "arbitrary"),
            vmem_limit_bytes=_VMEM_LIMIT),
        cost_estimate=cost,
    )(x, x,
      p["w_q"], p["b_q"].reshape(1, E), p["w_k"], p["b_k"].reshape(1, E),
      p["w_v"], p["b_v"].reshape(1, E), p["w_o"], p["b_o"].reshape(1, E),
      p["ln1_g"].reshape(1, E), p["ln1_b"].reshape(1, E))


# ---------------------------------------------------------------------------
# Fused FFN block:  LN2(x + Lin2(relu(Lin1(x))))   grid = (M // tm, dff // tdff)
# ---------------------------------------------------------------------------

def _ffn_block_kernel(x_ref, w1_ref, b1_ref, w2_ref, b2_ref, g_ref, beta_ref,
                      o_ref, acc_ref, *, eps):
    k = pl.program_id(1)

    @pl.when(k == 0)
    def _():
        acc_ref[...] = jnp.zeros_like(acc_ref)

    x = x_ref[...]                                                   # (tm, E) bf16
    h = jnp.dot(x, w1_ref[...],
                preferred_element_type=jnp.float32) + b1_ref[...]    # (tm, tdff) f32
    h = jnp.maximum(h, 0.0)                                          # relu
    acc_ref[...] += jnp.dot(h.astype(jnp.bfloat16), w2_ref[...],
                            preferred_element_type=jnp.float32)

    @pl.when(k == pl.num_programs(1) - 1)
    def _():
        y = acc_ref[...] + b2_ref[...]
        o_ref[...] = _layernorm(x.astype(jnp.float32) + y,
                                g_ref[...], beta_ref[...], eps).astype(o_ref.dtype)


def ffn_block(x, p, eps=1e-5):
    """x: (M, E) bf16  ->  LayerNorm2(x + FFN(x)) : (M, E) bf16."""
    M, E = x.shape
    dff = p["lin1_w"].shape[1]
    tm = _pick_row_tile(M, _ROW_TILE_TARGET)

    # dff tile: keep the two streamed (double-buffered bf16) weight tiles within
    # ~1/3 of the VMEM budget so W1/W2 never have to be fully resident.
    budget = _VMEM_LIMIT // 3
    tdff_cap = max(128, budget // (8 * E))        # 2 weights * 2 buffers * 2 B
    tdff = _pick_ff_tile(dff, min(tdff_cap, dff))
    n_k = dff // tdff
    const_w = (n_k == 1)                           # weights grid-invariant

    w1_spec = _const_spec((E, tdff)) if const_w else \
        pl.BlockSpec((E, tdff), lambda i, k: (0, k))
    b1_spec = _const_spec((1, tdff)) if const_w else \
        pl.BlockSpec((1, tdff), lambda i, k: (0, k))
    w2_spec = _const_spec((tdff, E)) if const_w else \
        pl.BlockSpec((tdff, E), lambda i, k: (k, 0))

    flops = 4 * M * E * dff
    bytes_accessed = 2 * M * E * 2 + 2 * E * dff * 2 + (dff + 3 * E) * 4
    cost = pl.CostEstimate(flops=int(flops), transcendentals=int(M),
                           bytes_accessed=int(bytes_accessed))

    return pl.pallas_call(
        functools.partial(_ffn_block_kernel, eps=eps),
        out_shape=jax.ShapeDtypeStruct((M, E), jnp.bfloat16),
        grid=(M // tm, n_k),
        in_specs=[
            pl.BlockSpec((tm, E), lambda i, k: (i, 0)),   # x rows (bf16)
            w1_spec,                                      # W1 tile (bf16)
            b1_spec,                                      # b1 tile
            w2_spec,                                      # W2 tile (bf16)
            _const_spec((1, E)),                          # b2
            _const_spec((1, E)),                          # ln2 gamma
            _const_spec((1, E)),                          # ln2 beta
        ],
        out_specs=pl.BlockSpec((tm, E), lambda i, k: (i, 0)),
        scratch_shapes=[pltpu.VMEM((tm, E), jnp.float32)],   # lin2 accumulator
        compiler_params=pltpu.CompilerParams(
            dimension_semantics=("parallel", "arbitrary"),
            vmem_limit_bytes=_VMEM_LIMIT),
        cost_estimate=cost,
    )(x, p["lin1_w"], p["lin1_b"].reshape(1, dff),
      p["lin2_w"], p["lin2_b"].reshape(1, E),
      p["ln2_g"].reshape(1, E), p["ln2_b"].reshape(1, E))


# ---------------------------------------------------------------------------
# LayerNorm-only kernel (optional final norm)
# ---------------------------------------------------------------------------

def _ln_kernel(x_ref, g_ref, b_ref, o_ref, *, eps):
    o_ref[...] = _layernorm(x_ref[...].astype(jnp.float32),
                            g_ref[...], b_ref[...], eps)


def layernorm(x, gamma, beta, eps=1e-5):
    """x: (M, E) bf16 -> LayerNorm(x) : (M, E) f32."""
    M, E = x.shape
    tm = _pick_row_tile(M, _ROW_TILE_TARGET)
    return pl.pallas_call(
        functools.partial(_ln_kernel, eps=eps),
        out_shape=jax.ShapeDtypeStruct((M, E), jnp.float32),
        grid=(M // tm,),
        in_specs=[pl.BlockSpec((tm, E), lambda i: (i, 0)),
                  _const_spec((1, E)),
                  _const_spec((1, E))],
        out_specs=pl.BlockSpec((tm, E), lambda i: (i, 0)),
        compiler_params=pltpu.CompilerParams(
            dimension_semantics=("parallel",),
            vmem_limit_bytes=_VMEM_LIMIT),
    )(x, gamma.reshape(1, E), beta.reshape(1, E))


# ---------------------------------------------------------------------------
# Encoder layer / encoder wrappers
# ---------------------------------------------------------------------------

def encoder_layer_forward(x_bse, p, nhead):
    """One nn.TransformerEncoderLayer (post-norm, relu, eval-mode dropout)."""
    B, S, E = x_bse.shape
    x1 = attention_block(x_bse, p, nhead)            # (B, S, E) bf16
    x2 = ffn_block(x1.reshape(B * S, E), p)          # (B*S, E) bf16
    return x2.reshape(B, S, E)


def transformer_encoder_forward(src, layer_params, nhead, final_norm=None):
    """TransformerEncoder.forward: run N layers, optional final LayerNorm.

    src: (S, B, E) seq-first f32 (PyTorch nn.Transformer default layout).
    """
    S, B, E = src.shape
    # (B, S, E), lane-dense E, bf16 inter-layer activations (mem-bound workload).
    out = jnp.transpose(src, (1, 0, 2)).astype(jnp.bfloat16)
    for p in layer_params:
        out = encoder_layer_forward(out, p, nhead)
    if final_norm is not None:
        out = layernorm(out.reshape(B * S, E),
                        final_norm["g"], final_norm["b"]).reshape(B, S, E)
    else:
        out = out.astype(jnp.float32)
    return jnp.transpose(out, (1, 0, 2))             # back to (S, B, E) f32


# ---------------------------------------------------------------------------
# Deterministic parameter construction (synthetic init, not a checkpoint)
# ---------------------------------------------------------------------------

def make_layer_params(key, d_model, dim_ff, nhead):
    """Matmul weights stored (in, out), bf16; biases / LN params f32.

    NOTE: PyTorch stores Linear / in_proj weights as (out, in) — transpose when
    loading a real checkpoint; in_proj_weight is chunked [q; k; v] along dim 0.
    The head_dim**-0.5 q-scaling is folded into w_q / b_q here (one-time).
    """
    ks = jax.random.split(key, 6)
    scale = 0.02
    dh = d_model // nhead
    qscale = dh ** -0.5
    wq = jax.random.normal(ks[0], (d_model, d_model)) * scale
    return {
        "w_q": (wq * qscale).astype(jnp.bfloat16),
        "b_q": (jnp.zeros((d_model,), jnp.float32) * qscale),
        "w_k": (jax.random.normal(ks[1], (d_model, d_model)) * scale).astype(jnp.bfloat16),
        "b_k": jnp.zeros((d_model,), jnp.float32),
        "w_v": (jax.random.normal(ks[2], (d_model, d_model)) * scale).astype(jnp.bfloat16),
        "b_v": jnp.zeros((d_model,), jnp.float32),
        "w_o": (jax.random.normal(ks[3], (d_model, d_model)) * scale).astype(jnp.bfloat16),
        "b_o": jnp.zeros((d_model,), jnp.float32),
        "lin1_w": (jax.random.normal(ks[4], (d_model, dim_ff)) * scale).astype(jnp.bfloat16),
        "lin1_b": jnp.zeros((dim_ff,), jnp.float32),
        "lin2_w": (jax.random.normal(ks[5], (dim_ff, d_model)) * scale).astype(jnp.bfloat16),
        "lin2_b": jnp.zeros((d_model,), jnp.float32),
        "ln1_g": jnp.ones((d_model,), jnp.float32),
        "ln1_b": jnp.zeros((d_model,), jnp.float32),
        "ln2_g": jnp.ones((d_model,), jnp.float32),
        "ln2_b": jnp.zeros((d_model,), jnp.float32),
    }


if __name__ == "__main__":
    S, B, E = 8, 2, 32          # seq, batch, d_model
    NHEAD = 4
    DIM_FF = 64
    NUM_LAYERS = 2

    root = jax.random.PRNGKey(0)
    k_src, k_params = jax.random.split(root)
    src = jax.random.normal(k_src, (S, B, E), dtype=jnp.float32)

    # _get_clones deepcopies one initialized layer -> identical params per layer.
    base_params = make_layer_params(k_params, E, DIM_FF, NHEAD)
    layer_params = [base_params for _ in range(NUM_LAYERS)]
    final_norm = {"g": jnp.ones((E,), jnp.float32), "b": jnp.zeros((E,), jnp.float32)}

    fwd = jax.jit(
        lambda s, lp, fn: transformer_encoder_forward(s, lp, NHEAD, final_norm=fn))
    out = jax.block_until_ready(fwd(src, layer_params, final_norm))

    assert out.shape == (S, B, E)
    assert out.dtype == jnp.float32
    assert bool(jnp.all(jnp.isfinite(out)))
    print("KERNEL_OK")
</pallas_src>

<mosaic_0001>
module attributes {stable_mosaic.version = 11 : i64} {
  func.func @_ffn_block_kernel(%arg0: i32, %arg1: i32, %arg2: memref<16x32xbf16, #tpu.memory_space<vmem>>, %arg3: memref<32x64xbf16, #tpu.memory_space<vmem>>, %arg4: memref<1x64xf32, #tpu.memory_space<vmem>>, %arg5: memref<64x32xbf16, #tpu.memory_space<vmem>>, %arg6: memref<1x32xf32, #tpu.memory_space<vmem>>, %arg7: memref<1x32xf32, #tpu.memory_space<vmem>>, %arg8: memref<1x32xf32, #tpu.memory_space<vmem>>, %arg9: memref<16x32xbf16, #tpu.memory_space<vmem>>, %arg10: memref<16x32xf32, #tpu.memory_space<vmem>>) attributes {dimension_semantics = [#tpu.dimension_semantics<parallel>, #tpu.dimension_semantics<arbitrary>], iteration_bounds = array<i64: 1, 1>, scalar_prefetch = 0 : i64, scratch_operands = 1 : i64, tpu.core_type = #tpu.core_type<tc>, window_params = [{transform_indices = @transform_0, window_bounds = array<i64: 16, 32>}, {pipeline_mode = #tpu.pipeline_mode<synchronous>, transform_indices = @transform_1, window_bounds = array<i64: 32, 64>}, {pipeline_mode = #tpu.pipeline_mode<synchronous>, transform_indices = @transform_2, window_bounds = array<i64: 1, 64>}, {pipeline_mode = #tpu.pipeline_mode<synchronous>, transform_indices = @transform_3, window_bounds = array<i64: 64, 32>}, {pipeline_mode = #tpu.pipeline_mode<synchronous>, transform_indices = @transform_4, window_bounds = array<i64: 1, 32>}, {pipeline_mode = #tpu.pipeline_mode<synchronous>, transform_indices = @transform_5, window_bounds = array<i64: 1, 32>}, {pipeline_mode = #tpu.pipeline_mode<synchronous>, transform_indices = @transform_6, window_bounds = array<i64: 1, 32>}, {transform_indices = @transform_7, window_bounds = array<i64: 16, 32>}]} {
    %c0_i32 = arith.constant 0 : i32
    %0 = arith.cmpi eq, %arg1, %c0_i32 : i32
    %1 = arith.extui %0 : i1 to i32
    %c0_i32_0 = arith.constant 0 : i32
    %2 = arith.cmpi ne, %1, %c0_i32_0 : i32
    scf.if %2 {
      %cst_16 = arith.constant 0.000000e+00 : f32
      %20 = vector.broadcast %cst_16 : f32 to vector<16x32xf32>
      %c0_17 = arith.constant 0 : index
      %c0_18 = arith.constant 0 : index
      %21 = vector.load %arg10[%c0_17, %c0_18] : memref<16x32xf32, #tpu.memory_space<vmem>>, vector<16x32xf32>
      tpu.vector_store %arg10[%c0_17, %c0_18], %20 {strides = array<i32>} : memref<16x32xf32, #tpu.memory_space<vmem>>, vector<16x32xf32>,
    } else {
    }
    %c0 = arith.constant 0 : index
    %c0_1 = arith.constant 0 : index
    %3 = vector.load %arg2[%c0, %c0_1] : memref<16x32xbf16, #tpu.memory_space<vmem>>, vector<16x32xbf16>
    %c0_2 = arith.constant 0 : index
    %c0_3 = arith.constant 0 : index
    %4 = vector.load %arg3[%c0_2, %c0_3] : memref<32x64xbf16, #tpu.memory_space<vmem>>, vector<32x64xbf16>
    %cst = arith.constant dense<0.000000e+00> : vector<16x64xf32>
    %5 = tpu.matmul %3, %4, %cst {dimension_numbers = #tpu.dot_dimension_numbers<[1], [0], [0], [1], [0, 0, 1, 1], [], []>} : vector<16x32xbf16>, vector<32x64xbf16>, vector<16x64xf32> -> vector<16x64xf32>
    %c0_4 = arith.constant 0 : index
    %c0_5 = arith.constant 0 : index
    %6 = vector.load %arg4[%c0_4, %c0_5] : memref<1x64xf32, #tpu.memory_space<vmem>>, vector<1x64xf32>
    %7 = vector.broadcast %6 : vector<1x64xf32> to vector<16x64xf32>
    %8 = arith.addf %5, %7 : vector<16x64xf32>
    %cst_6 = arith.constant 0.000000e+00 : f32
    %9 = vector.broadcast %cst_6 : f32 to vector<16x64xf32>
    %10 = arith.maximumf %8, %9 : vector<16x64xf32>
    %c0_7 = arith.constant 0 : index
    %c0_8 = arith.constant 0 : index
    %11 = vector.load %arg10[%c0_7, %c0_8] : memref<16x32xf32, #tpu.memory_space<vmem>>, vector<16x32xf32>
    %12 = arith.truncf %10 : vector<16x64xf32> to vector<16x64xbf16>
    %c0_9 = arith.constant 0 : index
    %c0_10 = arith.constant 0 : index
    %13 = vector.load %arg5[%c0_9, %c0_10] : memref<64x32xbf16, #tpu.memory_space<vmem>>, vector<64x32xbf16>
    %cst_11 = arith.constant dense<0.000000e+00> : vector<16x32xf32>
    %14 = tpu.matmul %12, %13, %cst_11 {dimension_numbers = #tpu.dot_dimension_numbers<[1], [0], [0], [1], [0, 0, 1, 1], [], []>} : vector<16x64xbf16>, vector<64x32xbf16>, vector<16x32xf32> -> vector<16x32xf32>
    %15 = arith.addf %11, %14 : vector<16x32xf32>
    %c0_12 = arith.constant 0 : index
    %c0_13 = arith.constant 0 : index
    %16 = vector.load %arg10[%c0_12, %c0_13] : memref<16x32xf32, #tpu.memory_space<vmem>>, vector<16x32xf32>
    tpu.vector_store %arg10[%c0_12, %c0_13], %15 {strides = array<i32>} : memref<16x32xf32, #tpu.memory_space<vmem>>, vector<16x32xf32>,
    %c0_i32_14 = arith.constant 0 : i32
    %17 = arith.cmpi eq, %arg1, %c0_i32_14 : i32
    %18 = arith.extui %17 : i1 to i32
    %c0_i32_15 = arith.constant 0 : i32
    %19 = arith.cmpi ne, %18, %c0_i32_15 : i32
    scf.if %19 {
      %c0_16 = arith.constant 0 : index
      %c0_17 = arith.constant 0 : index
      %20 = vector.load %arg10[%c0_16, %c0_17] : memref<16x32xf32, #tpu.memory_space<vmem>>, vector<16x32xf32>
      %c0_18 = arith.constant 0 : index
      %c0_19 = arith.constant 0 : index
      %21 = vector.load %arg6[%c0_18, %c0_19] : memref<1x32xf32, #tpu.memory_space<vmem>>, vector<1x32xf32>
      %22 = vector.broadcast %21 : vector<1x32xf32> to vector<16x32xf32>
      %23 = arith.addf %20, %22 : vector<16x32xf32>
      %24 = arith.extf %3 : vector<16x32xbf16> to vector<16x32xf32>
      %25 = arith.addf %24, %23 : vector<16x32xf32>
      %c0_20 = arith.constant 0 : index
      %c0_21 = arith.constant 0 : index
      %26 = vector.load %arg7[%c0_20, %c0_21] : memref<1x32xf32, #tpu.memory_space<vmem>>, vector<1x32xf32>
      %c0_22 = arith.constant 0 : index
      %c0_23 = arith.constant 0 : index
      %27 = vector.load %arg8[%c0_22, %c0_23] : memref<1x32xf32, #tpu.memory_space<vmem>>, vector<1x32xf32>
      %cst_24 = arith.constant dense<0.000000e+00> : vector<16xf32>
      %28 = vector.multi_reduction <add>, %25, %cst_24 [1] : vector<16x32xf32> to vector<16xf32>
      %29 = vector.shape_cast %28 : vector<16xf32> to vector<16x1xf32>
      %cst_25 = arith.constant 3.200000e+01 : f32
      %30 = vector.broadcast %cst_25 : f32 to vector<16x1xf32>
      %31 = arith.divf %29, %30 : vector<16x1xf32>
      %32 = vector.broadcast %31 : vector<16x1xf32> to vector<16x32xf32>
      %33 = arith.subf %25, %32 : vector<16x32xf32>
      %34 = arith.mulf %33, %33 : vector<16x32xf32>
      %cst_26 = arith.constant dense<0.000000e+00> : vector<16xf32>
      %35 = vector.multi_reduction <add>, %34, %cst_26 [1] : vector<16x32xf32> to vector<16xf32>
      %36 = vector.shape_cast %35 : vector<16xf32> to vector<16x1xf32>
      %cst_27 = arith.constant 3.200000e+01 : f32
      %37 = vector.broadcast %cst_27 : f32 to vector<16x1xf32>
      %38 = arith.divf %36, %37 : vector<16x1xf32>
      %39 = vector.broadcast %31 : vector<16x1xf32> to vector<16x32xf32>
      %40 = arith.subf %25, %39 : vector<16x32xf32>
      %cst_28 = arith.constant 9.99999974E-6 : f32
      %41 = vector.broadcast %cst_28 : f32 to vector<16x1xf32>
      %42 = arith.addf %38, %41 : vector<16x1xf32>
      %43 = math.rsqrt %42 : vector<16x1xf32>
      %44 = vector.broadcast %43 : vector<16x1xf32> to vector<16x32xf32>
      %45 = arith.mulf %40, %44 : vector<16x32xf32>
      %46 = vector.broadcast %26 : vector<1x32xf32> to vector<16x32xf32>
      %47 = arith.mulf %45, %46 : vector<16x32xf32>
      %48 = vector.broadcast %27 : vector<1x32xf32> to vector<16x32xf32>
      %49 = arith.addf %47, %48 : vector<16x32xf32>
      %50 = arith.truncf %49 : vector<16x32xf32> to vector<16x32xbf16>
      %c0_29 = arith.constant 0 : index
      %c0_30 = arith.constant 0 : index
      %51 = vector.load %arg9[%c0_29, %c0_30] : memref<16x32xbf16, #tpu.memory_space<vmem>>, vector<16x32xbf16>
      tpu.vector_store %arg9[%c0_29, %c0_30], %50 {strides = array<i32>} : memref<16x32xbf16, #tpu.memory_space<vmem>>, vector<16x32xbf16>,
    } else {
    }
    return
  }
  func.func @transform_0(%arg0: i32, %arg1: i32) -> (i32, i32) {
    %c0_i32 = arith.constant 0 : i32
    %c0_i32_0 = arith.constant 0 : i32
    return %arg0, %c0_i32 : i32, i32
  }
  func.func @transform_1(%arg0: i32, %arg1: i32) -> (i32, i32) {
    %c0_i32 = arith.constant 0 : i32
    %c0_i32_0 = arith.constant 0 : i32
    %c0_i32_1 = arith.constant 0 : i32
    return %c0_i32, %c0_i32_0 : i32, i32
  }
  func.func @transform_2(%arg0: i32, %arg1: i32) -> (i32, i32) {
    %c0_i32 = arith.constant 0 : i32
    %c0_i32_0 = arith.constant 0 : i32
    %c0_i32_1 = arith.constant 0 : i32
    return %c0_i32, %c0_i32_0 : i32, i32
  }
  func.func @transform_3(%arg0: i32, %arg1: i32) -> (i32, i32) {
    %c0_i32 = arith.constant 0 : i32
    %c0_i32_0 = arith.constant 0 : i32
    %c0_i32_1 = arith.constant 0 : i32
    return %c0_i32, %c0_i32_0 : i32, i32
  }
  func.func @transform_4(%arg0: i32, %arg1: i32) -> (i32, i32) {
    %c0_i32 = arith.constant 0 : i32
    %c0_i32_0 = arith.constant 0 : i32
    %c0_i32_1 = arith.constant 0 : i32
    return %c0_i32, %c0_i32_0 : i32, i32
  }
  func.func @transform_5(%arg0: i32, %arg1: i32) -> (i32, i32) {
    %c0_i32 = arith.constant 0 : i32
    %c0_i32_0 = arith.constant 0 : i32
    %c0_i32_1 = arith.constant 0 : i32
    return %c0_i32, %c0_i32_0 : i32, i32
  }
  func.func @transform_6(%arg0: i32, %arg1: i32) -> (i32, i32) {
    %c0_i32 = arith.constant 0 : i32
    %c0_i32_0 = arith.constant 0 : i32
    %c0_i32_1 = arith.constant 0 : i32
    return %c0_i32, %c0_i32_0 : i32, i32
  }
  func.func @transform_7(%arg0: i32, %arg1: i32) -> (i32, i32) {
    %c0_i32 = arith.constant 0 : i32
    %c0_i32_0 = arith.constant 0 : i32
    return %arg0, %c0_i32 : i32, i32
  }
}

module attributes {stable_mosaic.version = 11 : i64} {
  func.func @_attn_block_kernel(%arg0: i32, %arg1: i32, %arg2: memref<1x8x32xbf16, #tpu.memory_space<vmem>>, %arg3: memref<1x8x32xbf16, #tpu.memory_space<vmem>>, %arg4: memref<32x32xbf16, #tpu.memory_space<vmem>>, %arg5: memref<1x32xf32, #tpu.memory_space<vmem>>, %arg6: memref<32x32xbf16, #tpu.memory_space<vmem>>, %arg7: memref<1x32xf32, #tpu.memory_space<vmem>>, %arg8: memref<32x32xbf16, #tpu.memory_space<vmem>>, %arg9: memref<1x32xf32, #tpu.memory_space<vmem>>, %arg10: memref<32x32xbf16, #tpu.memory_space<vmem>>, %arg11: memref<1x32xf32, #tpu.memory_space<vmem>>, %arg12: memref<1x32xf32, #tpu.memory_space<vmem>>, %arg13: memref<1x32xf32, #tpu.memory_space<vmem>>, %arg14: memref<1x8x32xbf16, #tpu.memory_space<vmem>>, %arg15: memref<8x32xbf16, #tpu.memory_space<vmem>>, %arg16: memref<8x32xbf16, #tpu.memory_space<vmem>>, %arg17: memref<8x32xf32, #tpu.memory_space<vmem>>) attributes {dimension_semantics = [#tpu.dimension_semantics<parallel>, #tpu.dimension_semantics<arbitrary>], iteration_bounds = array<i64: 2, 1>, scalar_prefetch = 0 : i64, scratch_operands = 3 : i64, tpu.core_type = #tpu.core_type<tc>, window_params = [{transform_indices = @transform_0, window_bounds = array<i64: 1, 8, 32>}, {transform_indices = @transform_1, window_bounds = array<i64: 1, 8, 32>}, {pipeline_mode = #tpu.pipeline_mode<synchronous>, transform_indices = @transform_2, window_bounds = array<i64: 32, 32>}, {pipeline_mode = #tpu.pipeline_mode<synchronous>, transform_indices = @transform_3, window_bounds = array<i64: 1, 32>}, {pipeline_mode = #tpu.pipeline_mode<synchronous>, transform_indices = @transform_4, window_bounds = array<i64: 32, 32>}, {pipeline_mode = #tpu.pipeline_mode<synchronous>, transform_indices = @transform_5, window_bounds = array<i64: 1, 32>}, {pipeline_mode = #tpu.pipeline_mode<synchronous>, transform_indices = @transform_6, window_bounds = array<i64: 32, 32>}, {pipeline_mode = #tpu.pipeline_mode<synchronous>, transform_indices = @transform_7, window_bounds = array<i64: 1, 32>}, {pipeline_mode = #tpu.pipeline_mode<synchronous>, transform_indices = @transform_8, window_bounds = array<i64: 32, 32>}, {pipeline_mode = #tpu.pipeline_mode<synchronous>, transform_indices = @transform_9, window_bounds = array<i64: 1, 32>}, {pipeline_mode = #tpu.pipeline_mode<synchronous>, transform_indices = @transform_10, window_bounds = array<i64: 1, 32>}, {pipeline_mode = #tpu.pipeline_mode<synchronous>, transform_indices = @transform_11, window_bounds = array<i64: 1, 32>}, {transform_indices = @transform_12, window_bounds = array<i64: 1, 8, 32>}]} {
    %c0_i32 = arith.constant 0 : i32
    %0 = arith.cmpi eq, %arg1, %c0_i32 : i32
    %1 = arith.extui %0 : i1 to i32
    %c0_i32_0 = arith.constant 0 : i32
    %2 = arith.cmpi ne, %1, %c0_i32_0 : i32
    scf.if %2 {
      %c0_51 = arith.constant 0 : index
      %c0_52 = arith.constant 0 : index
      %c0_53 = arith.constant 0 : index
      %121 = vector.load %arg3[%c0_51, %c0_52, %c0_53] : memref<1x8x32xbf16, #tpu.memory_space<vmem>>, vector<1x8x32xbf16>
      %122 = vector.shape_cast %121 : vector<1x8x32xbf16> to vector<8x32xbf16>
      %c0_54 = arith.constant 0 : index
      %c0_55 = arith.constant 0 : index
      %123 = vector.load %arg6[%c0_54, %c0_55] : memref<32x32xbf16, #tpu.memory_space<vmem>>, vector<32x32xbf16>
      %cst_56 = arith.constant dense<0.000000e+00> : vector<8x32xf32>
      %124 = tpu.matmul %122, %123, %cst_56 {dimension_numbers = #tpu.dot_dimension_numbers<[1], [0], [0], [1], [0, 0, 1, 1], [], []>} : vector<8x32xbf16>, vector<32x32xbf16>, vector<8x32xf32> -> vector<8x32xf32>
      %c0_57 = arith.constant 0 : index
      %c0_58 = arith.constant 0 : index
      %125 = vector.load %arg7[%c0_57, %c0_58] : memref<1x32xf32, #tpu.memory_space<vmem>>, vector<1x32xf32>
      %126 = vector.broadcast %125 : vector<1x32xf32> to vector<8x32xf32>
      %127 = arith.addf %124, %126 : vector<8x32xf32>
      %128 = arith.truncf %127 : vector<8x32xf32> to vector<8x32xbf16>
      %c0_59 = arith.constant 0 : index
      %c0_60 = arith.constant 0 : index
      %129 = vector.load %arg15[%c0_59, %c0_60] : memref<8x32xbf16, #tpu.memory_space<vmem>>, vector<8x32xbf16>
      tpu.vector_store %arg15[%c0_59, %c0_60], %128 {strides = array<i32>} : memref<8x32xbf16, #tpu.memory_space<vmem>>, vector<8x32xbf16>,
      %c0_61 = arith.constant 0 : index
      %c0_62 = arith.constant 0 : index
      %130 = vector.load %arg8[%c0_61, %c0_62] : memref<32x32xbf16, #tpu.memory_space<vmem>>, vector<32x32xbf16>
      %cst_63 = arith.constant dense<0.000000e+00> : vector<8x32xf32>
      %131 = tpu.matmul %122, %130, %cst_63 {dimension_numbers = #tpu.dot_dimension_numbers<[1], [0], [0], [1], [0, 0, 1, 1], [], []>} : vector<8x32xbf16>, vector<32x32xbf16>, vector<8x32xf32> -> vector<8x32xf32>
      %c0_64 = arith.constant 0 : index
      %c0_65 = arith.constant 0 : index
      %132 = vector.load %arg9[%c0_64, %c0_65] : memref<1x32xf32, #tpu.memory_space<vmem>>, vector<1x32xf32>
      %133 = vector.broadcast %132 : vector<1x32xf32> to vector<8x32xf32>
      %134 = arith.addf %131, %133 : vector<8x32xf32>
      %135 = arith.truncf %134 : vector<8x32xf32> to vector<8x32xbf16>
      %c0_66 = arith.constant 0 : index
      %c0_67 = arith.constant 0 : index
      %136 = vector.load %arg16[%c0_66, %c0_67] : memref<8x32xbf16, #tpu.memory_space<vmem>>, vector<8x32xbf16>
      tpu.vector_store %arg16[%c0_66, %c0_67], %135 {strides = array<i32>} : memref<8x32xbf16, #tpu.memory_space<vmem>>, vector<8x32xbf16>,
    } else {
    }
    %c0 = arith.constant 0 : index
    %c0_1 = arith.constant 0 : index
    %c0_2 = arith.constant 0 : index
    %3 = vector.load %arg2[%c0, %c0_1, %c0_2] : memref<1x8x32xbf16, #tpu.memory_space<vmem>>, vector<1x8x32xbf16>
    %4 = vector.shape_cast %3 : vector<1x8x32xbf16> to vector<8x32xbf16>
    %c0_3 = arith.constant 0 : index
    %c0_4 = arith.constant 0 : index
    %5 = vector.load %arg4[%c0_3, %c0_4] : memref<32x32xbf16, #tpu.memory_space<vmem>>, vector<32x32xbf16>
    %cst = arith.constant dense<0.000000e+00> : vector<8x32xf32>
    %6 = tpu.matmul %4, %5, %cst {dimension_numbers = #tpu.dot_dimension_numbers<[1], [0], [0], [1], [0, 0, 1, 1], [], []>} : vector<8x32xbf16>, vector<32x32xbf16>, vector<8x32xf32> -> vector<8x32xf32>
    %c0_5 = arith.constant 0 : index
    %c0_6 = arith.constant 0 : index
    %7 = vector.load %arg5[%c0_5, %c0_6] : memref<1x32xf32, #tpu.memory_space<vmem>>, vector<1x32xf32>
    %8 = vector.broadcast %7 : vector<1x32xf32> to vector<8x32xf32>
    %9 = arith.addf %6, %8 : vector<8x32xf32>
    %c0_7 = arith.constant 0 : index
    %c0_8 = arith.constant 0 : index
    %10 = vector.load %arg15[%c0_7, %c0_8] : memref<8x32xbf16, #tpu.memory_space<vmem>>, vector<8x32xbf16>
    %c0_9 = arith.constant 0 : index
    %c0_10 = arith.constant 0 : index
    %11 = vector.load %arg16[%c0_9, %c0_10] : memref<8x32xbf16, #tpu.memory_space<vmem>>, vector<8x32xbf16>
    %12 = vector.extract_strided_slice %9 {offsets = [0, 0], sizes = [8, 8], strides = [1, 1]} : vector<8x32xf32> to vector<8x8xf32>
    %13 = arith.truncf %12 : vector<8x8xf32> to vector<8x8xbf16>
    %14 = vector.extract_strided_slice %10 {offsets = [0, 0], sizes = [8, 8], strides = [1, 1]} : vector<8x32xbf16> to vector<8x8xbf16>
    %15 = vector.extract_strided_slice %11 {offsets = [0, 0], sizes = [8, 8], strides = [1, 1]} : vector<8x32xbf16> to vector<8x8xbf16>
    %cst_11 = arith.constant dense<0.000000e+00> : vector<8x8xf32>
    %16 = tpu.matmul %13, %14, %cst_11 {dimension_numbers = #tpu.dot_dimension_numbers<[1], [1], [0], [0], [0, 0, 1, 0], [], []>} : vector<8x8xbf16>, vector<8x8xbf16>, vector<8x8xf32> -> vector<8x8xf32>
    %cst_12 = arith.constant dense<0xFF800000> : vector<8xf32>
    %17 = vector.multi_reduction <maximumf>, %16, %cst_12 [1] : vector<8x8xf32> to vector<8xf32>
    %18 = vector.shape_cast %17 : vector<8xf32> to vector<8x1xf32>
    %19 = vector.broadcast %18 : vector<8x1xf32> to vector<8x8xf32>
    %20 = arith.subf %16, %19 : vector<8x8xf32>
    %21 = math.exp %20 : vector<8x8xf32>
    %cst_13 = arith.constant dense<0.000000e+00> : vector<8xf32>
    %22 = vector.multi_reduction <add>, %21, %cst_13 [1] : vector<8x8xf32> to vector<8xf32>
    %23 = vector.shape_cast %22 : vector<8xf32> to vector<8x1xf32>
    %24 = tpu.reciprocal %23 {approx = true} : vector<8x1xf32> -> vector<8x1xf32>
    %25 = vector.broadcast %24 : vector<8x1xf32> to vector<8x8xf32>
    %26 = arith.mulf %21, %25 : vector<8x8xf32>
    %27 = arith.truncf %26 : vector<8x8xf32> to vector<8x8xbf16>
    %cst_14 = arith.constant dense<0.000000e+00> : vector<8x8xf32>
    %28 = tpu.matmul %27, %15, %cst_14 {dimension_numbers = #tpu.dot_dimension_numbers<[1], [0], [0], [1], [0, 0, 1, 1], [], []>} : vector<8x8xbf16>, vector<8x8xbf16>, vector<8x8xf32> -> vector<8x8xf32>
    %c0_15 = arith.constant 0 : index
    %c0_16 = arith.constant 0 : index
    %29 = vector.load %arg17[%c0_15, %c0_16] : memref<8x32xf32, #tpu.memory_space<vmem>>, vector<8x8xf32>
    tpu.vector_store %arg17[%c0_15, %c0_16], %28 {strides = array<i32>} : memref<8x32xf32, #tpu.memory_space<vmem>>, vector<8x8xf32>,
    %30 = vector.extract_strided_slice %9 {offsets = [0, 8], sizes = [8, 8], strides = [1, 1]} : vector<8x32xf32> to vector<8x8xf32>
    %31 = arith.truncf %30 : vector<8x8xf32> to vector<8x8xbf16>
    %32 = vector.extract_strided_slice %10 {offsets = [0, 8], sizes = [8, 8], strides = [1, 1]} : vector<8x32xbf16> to vector<8x8xbf16>
    %33 = vector.extract_strided_slice %11 {offsets = [0, 8], sizes = [8, 8], strides = [1, 1]} : vector<8x32xbf16> to vector<8x8xbf16>
    %cst_17 = arith.constant dense<0.000000e+00> : vector<8x8xf32>
    %34 = tpu.matmul %31, %32, %cst_17 {dimension_numbers = #tpu.dot_dimension_numbers<[1], [1], [0], [0], [0, 0, 1, 0], [], []>} : vector<8x8xbf16>, vector<8x8xbf16>, vector<8x8xf32> -> vector<8x8xf32>
    %cst_18 = arith.constant dense<0xFF800000> : vector<8xf32>
    %35 = vector.multi_reduction <maximumf>, %34, %cst_18 [1] : vector<8x8xf32> to vector<8xf32>
    %36 = vector.shape_cast %35 : vector<8xf32> to vector<8x1xf32>
    %37 = vector.broadcast %36 : vector<8x1xf32> to vector<8x8xf32>
    %38 = arith.subf %34, %37 : vector<8x8xf32>
    %39 = math.exp %38 : vector<8x8xf32>
    %cst_19 = arith.constant dense<0.000000e+00> : vector<8xf32>
    %40 = vector.multi_reduction <add>, %39, %cst_19 [1] : vector<8x8xf32> to vector<8xf32>
    %41 = vector.shape_cast %40 : vector<8xf32> to vector<8x1xf32>
    %42 = tpu.reciprocal %41 {approx = true} : vector<8x1xf32> -> vector<8x1xf32>
    %43 = vector.broadcast %42 : vector<8x1xf32> to vector<8x8xf32>
    %44 = arith.mulf %39, %43 : vector<8x8xf32>
    %45 = arith.truncf %44 : vector<8x8xf32> to vector<8x8xbf16>
    %cst_20 = arith.constant dense<0.000000e+00> : vector<8x8xf32>
    %46 = tpu.matmul %45, %33, %cst_20 {dimension_numbers = #tpu.dot_dimension_numbers<[1], [0], [0], [1], [0, 0, 1, 1], [], []>} : vector<8x8xbf16>, vector<8x8xbf16>, vector<8x8xf32> -> vector<8x8xf32>
    %c0_21 = arith.constant 0 : index
    %c8 = arith.constant 8 : index
    %47 = vector.load %arg17[%c0_21, %c8] : memref<8x32xf32, #tpu.memory_space<vmem>>, vector<8x8xf32>
    tpu.vector_store %arg17[%c0_21, %c8], %46 {strides = array<i32>} : memref<8x32xf32, #tpu.memory_space<vmem>>, vector<8x8xf32>,
    %48 = vector.extract_strided_slice %9 {offsets = [0, 16], sizes = [8, 8], strides = [1, 1]} : vector<8x32xf32> to vector<8x8xf32>
    %49 = arith.truncf %48 : vector<8x8xf32> to vector<8x8xbf16>
    %50 = vector.extract_strided_slice %10 {offsets = [0, 16], sizes = [8, 8], strides = [1, 1]} : vector<8x32xbf16> to vector<8x8xbf16>
    %51 = vector.extract_strided_slice %11 {offsets = [0, 16], sizes = [8, 8], strides = [1, 1]} : vector<8x32xbf16> to vector<8x8xbf16>
    %cst_22 = arith.constant dense<0.000000e+00> : vector<8x8xf32>
    %52 = tpu.matmul %49, %50, %cst_22 {dimension_numbers = #tpu.dot_dimension_numbers<[1], [1], [0], [0], [0, 0, 1, 0], [], []>} : vector<8x8xbf16>, vector<8x8xbf16>, vector<8x8xf32> -> vector<8x8xf32>
    %cst_23 = arith.constant dense<0xFF800000> : vector<8xf32>
    %53 = vector.multi_reduction <maximumf>, %52, %cst_23 [1] : vector<8x8xf32> to vector<8xf32>
    %54 = vector.shape_cast %53 : vector<8xf32> to vector<8x1xf32>
    %55 = vector.broadcast %54 : vector<8x1xf32> to vector<8x8xf32>
    %56 = arith.subf %52, %55 : vector<8x8xf32>
    %57 = math.exp %56 : vector<8x8xf32>
    %cst_24 = arith.constant dense<0.000000e+00> : vector<8xf32>
    %58 = vector.multi_reduction <add>, %57, %cst_24 [1] : vector<8x8xf32> to vector<8xf32>
    %59 = vector.shape_cast %58 : vector<8xf32> to vector<8x1xf32>
    %60 = tpu.reciprocal %59 {approx = true} : vector<8x1xf32> -> vector<8x1xf32>
    %61 = vector.broadcast %60 : vector<8x1xf32> to vector<8x8xf32>
    %62 = arith.mulf %57, %61 : vector<8x8xf32>
    %63 = arith.truncf %62 : vector<8x8xf32> to vector<8x8xbf16>
    %cst_25 = arith.constant dense<0.000000e+00> : vector<8x8xf32>
    %64 = tpu.matmul %63, %51, %cst_25 {dimension_numbers = #tpu.dot_dimension_numbers<[1], [0], [0], [1], [0, 0, 1, 1], [], []>} : vector<8x8xbf16>, vector<8x8xbf16>, vector<8x8xf32> -> vector<8x8xf32>
    %c0_26 = arith.constant 0 : index
    %c16 = arith.constant 16 : index
    %65 = vector.load %arg17[%c0_26, %c16] : memref<8x32xf32, #tpu.memory_space<vmem>>, vector<8x8xf32>
    tpu.vector_store %arg17[%c0_26, %c16], %64 {strides = array<i32>} : memref<8x32xf32, #tpu.memory_space<vmem>>, vector<8x8xf32>,
    %66 = vector.extract_strided_slice %9 {offsets = [0, 24], sizes = [8, 8], strides = [1, 1]} : vector<8x32xf32> to vector<8x8xf32>
    %67 = arith.truncf %66 : vector<8x8xf32> to vector<8x8xbf16>
    %68 = vector.extract_strided_slice %10 {offsets = [0, 24], sizes = [8, 8], strides = [1, 1]} : vector<8x32xbf16> to vector<8x8xbf16>
    %69 = vector.extract_strided_slice %11 {offsets = [0, 24], sizes = [8, 8], strides = [1, 1]} : vector<8x32xbf16> to vector<8x8xbf16>
    %cst_27 = arith.constant dense<0.000000e+00> : vector<8x8xf32>
    %70 = tpu.matmul %67, %68, %cst_27 {dimension_numbers = #tpu.dot_dimension_numbers<[1], [1], [0], [0], [0, 0, 1, 0], [], []>} : vector<8x8xbf16>, vector<8x8xbf16>, vector<8x8xf32> -> vector<8x8xf32>
    %cst_28 = arith.constant dense<0xFF800000> : vector<8xf32>
    %71 = vector.multi_reduction <maximumf>, %70, %cst_28 [1] : vector<8x8xf32> to vector<8xf32>
    %72 = vector.shape_cast %71 : vector<8xf32> to vector<8x1xf32>
    %73 = vector.broadcast %72 : vector<8x1xf32> to vector<8x8xf32>
    %74 = arith.subf %70, %73 : vector<8x8xf32>
    %75 = math.exp %74 : vector<8x8xf32>
    %cst_29 = arith.constant dense<0.000000e+00> : vector<8xf32>
    %76 = vector.multi_reduction <add>, %75, %cst_29 [1] : vector<8x8xf32> to vector<8xf32>
    %77 = vector.shape_cast %76 : vector<8xf32> to vector<8x1xf32>
    %78 = tpu.reciprocal %77 {approx = true} : vector<8x1xf32> -> vector<8x1xf32>
    %79 = vector.broadcast %78 : vector<8x1xf32> to vector<8x8xf32>
    %80 = arith.mulf %75, %79 : vector<8x8xf32>
    %81 = arith.truncf %80 : vector<8x8xf32> to vector<8x8xbf16>
    %cst_30 = arith.constant dense<0.000000e+00> : vector<8x8xf32>
    %82 = tpu.matmul %81, %69, %cst_30 {dimension_numbers = #tpu.dot_dimension_numbers<[1], [0], [0], [1], [0, 0, 1, 1], [], []>} : vector<8x8xbf16>, vector<8x8xbf16>, vector<8x8xf32> -> vector<8x8xf32>
    %c0_31 = arith.constant 0 : index
    %c24 = arith.constant 24 : index
    %83 = vector.load %arg17[%c0_31, %c24] : memref<8x32xf32, #tpu.memory_space<vmem>>, vector<8x8xf32>
    tpu.vector_store %arg17[%c0_31, %c24], %82 {strides = array<i32>} : memref<8x32xf32, #tpu.memory_space<vmem>>, vector<8x8xf32>,
    %c0_32 = arith.constant 0 : index
    %c0_33 = arith.constant 0 : index
    %84 = vector.load %arg17[%c0_32, %c0_33] : memref<8x32xf32, #tpu.memory_space<vmem>>, vector<8x32xf32>
    %85 = arith.truncf %84 : vector<8x32xf32> to vector<8x32xbf16>
    %c0_34 = arith.constant 0 : index
    %c0_35 = arith.constant 0 : index
    %86 = vector.load %arg10[%c0_34, %c0_35] : memref<32x32xbf16, #tpu.memory_space<vmem>>, vector<32x32xbf16>
    %cst_36 = arith.constant dense<0.000000e+00> : vector<8x32xf32>
    %87 = tpu.matmul %85, %86, %cst_36 {dimension_numbers = #tpu.dot_dimension_numbers<[1], [0], [0], [1], [0, 0, 1, 1], [], []>} : vector<8x32xbf16>, vector<32x32xbf16>, vector<8x32xf32> -> vector<8x32xf32>
    %c0_37 = arith.constant 0 : index
    %c0_38 = arith.constant 0 : index
    %88 = vector.load %arg11[%c0_37, %c0_38] : memref<1x32xf32, #tpu.memory_space<vmem>>, vector<1x32xf32>
    %89 = vector.broadcast %88 : vector<1x32xf32> to vector<8x32xf32>
    %90 = arith.addf %87, %89 : vector<8x32xf32>
    %91 = arith.extf %4 : vector<8x32xbf16> to vector<8x32xf32>
    %92 = arith.addf %91, %90 : vector<8x32xf32>
    %c0_39 = arith.constant 0 : index
    %c0_40 = arith.constant 0 : index
    %93 = vector.load %arg12[%c0_39, %c0_40] : memref<1x32xf32, #tpu.memory_space<vmem>>, vector<1x32xf32>
    %c0_41 = arith.constant 0 : index
    %c0_42 = arith.constant 0 : index
    %94 = vector.load %arg13[%c0_41, %c0_42] : memref<1x32xf32, #tpu.memory_space<vmem>>, vector<1x32xf32>
    %cst_43 = arith.constant dense<0.000000e+00> : vector<8xf32>
    %95 = vector.multi_reduction <add>, %92, %cst_43 [1] : vector<8x32xf32> to vector<8xf32>
    %96 = vector.shape_cast %95 : vector<8xf32> to vector<8x1xf32>
    %cst_44 = arith.constant 3.200000e+01 : f32
    %97 = vector.broadcast %cst_44 : f32 to vector<8x1xf32>
    %98 = arith.divf %96, %97 : vector<8x1xf32>
    %99 = vector.broadcast %98 : vector<8x1xf32> to vector<8x32xf32>
    %100 = arith.subf %92, %99 : vector<8x32xf32>
    %101 = arith.mulf %100, %100 : vector<8x32xf32>
    %cst_45 = arith.constant dense<0.000000e+00> : vector<8xf32>
    %102 = vector.multi_reduction <add>, %101, %cst_45 [1] : vector<8x32xf32> to vector<8xf32>
    %103 = vector.shape_cast %102 : vector<8xf32> to vector<8x1xf32>
    %cst_46 = arith.constant 3.200000e+01 : f32
    %104 = vector.broadcast %cst_46 : f32 to vector<8x1xf32>
    %105 = arith.divf %103, %104 : vector<8x1xf32>
    %106 = vector.broadcast %98 : vector<8x1xf32> to vector<8x32xf32>
    %107 = arith.subf %92, %106 : vector<8x32xf32>
    %cst_47 = arith.constant 9.99999974E-6 : f32
    %108 = vector.broadcast %cst_47 : f32 to vector<8x1xf32>
    %109 = arith.addf %105, %108 : vector<8x1xf32>
    %110 = math.rsqrt %109 : vector<8x1xf32>
    %111 = vector.broadcast %110 : vector<8x1xf32> to vector<8x32xf32>
    %112 = arith.mulf %107, %111 : vector<8x32xf32>
    %113 = vector.broadcast %93 : vector<1x32xf32> to vector<8x32xf32>
    %114 = arith.mulf %112, %113 : vector<8x32xf32>
    %115 = vector.broadcast %94 : vector<1x32xf32> to vector<8x32xf32>
    %116 = arith.addf %114, %115 : vector<8x32xf32>
    %117 = arith.truncf %116 : vector<8x32xf32> to vector<8x32xbf16>
    %c0_48 = arith.constant 0 : index
    %c0_49 = arith.constant 0 : index
    %c0_50 = arith.constant 0 : index
    %118 = vector.load %arg14[%c0_48, %c0_49, %c0_50] : memref<1x8x32xbf16, #tpu.memory_space<vmem>>, vector<1x8x32xbf16>
    %119 = vector.shape_cast %118 : vector<1x8x32xbf16> to vector<8x32xbf16>
    %120 = vector.shape_cast %117 : vector<8x32xbf16> to vector<1x8x32xbf16>
    tpu.vector_store %arg14[%c0_48, %c0_49, %c0_50], %120 {strides = array<i32>} : memref<1x8x32xbf16, #tpu.memory_space<vmem>>, vector<1x8x32xbf16>,
    return
  }
  func.func @transform_0(%arg0: i32, %arg1: i32) -> (i32, i32, i32) {
    %c0_i32 = arith.constant 0 : i32
    %c0_i32_0 = arith.constant 0 : i32
    return %arg0, %arg1, %c0_i32 : i32, i32, i32
  }
  func.func @transform_1(%arg0: i32, %arg1: i32) -> (i32, i32, i32) {
    %c0_i32 = arith.constant 0 : i32
    %c0_i32_0 = arith.constant 0 : i32
    %c0_i32_1 = arith.constant 0 : i32
    return %arg0, %c0_i32, %c0_i32_0 : i32, i32, i32
  }
  func.func @transform_2(%arg0: i32, %arg1: i32) -> (i32, i32) {
    %c0_i32 = arith.constant 0 : i32
    %c0_i32_0 = arith.constant 0 : i32
    %c0_i32_1 = arith.constant 0 : i32
    return %c0_i32, %c0_i32_0 : i32, i32
  }
  func.func @transform_3(%arg0: i32, %arg1: i32) -> (i32, i32) {
    %c0_i32 = arith.constant 0 : i32
    %c0_i32_0 = arith.constant 0 : i32
    %c0_i32_1 = arith.constant 0 : i32
    return %c0_i32, %c0_i32_0 : i32, i32
  }
  func.func @transform_4(%arg0: i32, %arg1: i32) -> (i32, i32) {
    %c0_i32 = arith.constant 0 : i32
    %c0_i32_0 = arith.constant 0 : i32
    %c0_i32_1 = arith.constant 0 : i32
    return %c0_i32, %c0_i32_0 : i32, i32
  }
  func.func @transform_5(%arg0: i32, %arg1: i32) -> (i32, i32) {
    %c0_i32 = arith.constant 0 : i32
    %c0_i32_0 = arith.constant 0 : i32
    %c0_i32_1 = arith.constant 0 : i32
    return %c0_i32, %c0_i32_0 : i32, i32
  }
  func.func @transform_6(%arg0: i32, %arg1: i32) -> (i32, i32) {
    %c0_i32 = arith.constant 0 : i32
    %c0_i32_0 = arith.constant 0 : i32
    %c0_i32_1 = arith.constant 0 : i32
    return %c0_i32, %c0_i32_0 : i32, i32
  }
  func.func @transform_7(%arg0: i32, %arg1: i32) -> (i32, i32) {
    %c0_i32 = arith.constant 0 : i32
    %c0_i32_0 = arith.constant 0 : i32
    %c0_i32_1 = arith.constant 0 : i32
    return %c0_i32, %c0_i32_0 : i32, i32
  }
  func.func @transform_8(%arg0: i32, %arg1: i32) -> (i32, i32) {
    %c0_i32 = arith.constant 0 : i32
    %c0_i32_0 = arith.constant 0 : i32
    %c0_i32_1 = arith.constant 0 : i32
    return %c0_i32, %c0_i32_0 : i32, i32
  }
  func.func @transform_9(%arg0: i32, %arg1: i32) -> (i32, i32) {
    %c0_i32 = arith.constant 0 : i32
    %c0_i32_0 = arith.constant 0 : i32
    %c0_i32_1 = arith.constant 0 : i32
    return %c0_i32, %c0_i32_0 : i32, i32
  }
  func.func @transform_10(%arg0: i32, %arg1: i32) -> (i32, i32) {
    %c0_i32 = arith.constant 0 : i32
    %c0_i32_0 = arith.constant 0 : i32
    %c0_i32_1 = arith.constant 0 : i32
    return %c0_i32, %c0_i32_0 : i32, i32
  }
  func.func @transform_11(%arg0: i32, %arg1: i32) -> (i32, i32) {
    %c0_i32 = arith.constant 0 : i32
    %c0_i32_0 = arith.constant 0 : i32
    %c0_i32_1 = arith.constant 0 : i32
    return %c0_i32, %c0_i32_0 : i32, i32
  }
  func.func @transform_12(%arg0: i32, %arg1: i32) -> (i32, i32, i32) {
    %c0_i32 = arith.constant 0 : i32
    %c0_i32_0 = arith.constant 0 : i32
    return %arg0, %arg1, %c0_i32 : i32, i32, i32
  }
}

module attributes {stable_mosaic.version = 11 : i64} {
  func.func @_ffn_block_kernel(%arg0: i32, %arg1: i32, %arg2: memref<16x32xbf16, #tpu.memory_space<vmem>>, %arg3: memref<32x64xbf16, #tpu.memory_space<vmem>>, %arg4: memref<1x64xf32, #tpu.memory_space<vmem>>, %arg5: memref<64x32xbf16, #tpu.memory_space<vmem>>, %arg6: memref<1x32xf32, #tpu.memory_space<vmem>>, %arg7: memref<1x32xf32, #tpu.memory_space<vmem>>, %arg8: memref<1x32xf32, #tpu.memory_space<vmem>>, %arg9: memref<16x32xbf16, #tpu.memory_space<vmem>>, %arg10: memref<16x32xf32, #tpu.memory_space<vmem>>) attributes {dimension_semantics = [#tpu.dimension_semantics<parallel>, #tpu.dimension_semantics<arbitrary>], iteration_bounds = array<i64: 1, 1>, scalar_prefetch = 0 : i64, scratch_operands = 1 : i64, tpu.core_type = #tpu.core_type<tc>, window_params = [{transform_indices = @transform_0, window_bounds = array<i64: 16, 32>}, {pipeline_mode = #tpu.pipeline_mode<synchronous>, transform_indices = @transform_1, window_bounds = array<i64: 32, 64>}, {pipeline_mode = #tpu.pipeline_mode<synchronous>, transform_indices = @transform_2, window_bounds = array<i64: 1, 64>}, {pipeline_mode = #tpu.pipeline_mode<synchronous>, transform_indices = @transform_3, window_bounds = array<i64: 64, 32>}, {pipeline_mode = #tpu.pipeline_mode<synchronous>, transform_indices = @transform_4, window_bounds = array<i64: 1, 32>}, {pipeline_mode = #tpu.pipeline_mode<synchronous>, transform_indices = @transform_5, window_bounds = array<i64: 1, 32>}, {pipeline_mode = #tpu.pipeline_mode<synchronous>, transform_indices = @transform_6, window_bounds = array<i64: 1, 32>}, {transform_indices = @transform_7, window_bounds = array<i64: 16, 32>}]} {
    %c0_i32 = arith.constant 0 : i32
    %0 = arith.cmpi eq, %arg1, %c0_i32 : i32
    %1 = arith.extui %0 : i1 to i32
    %c0_i32_0 = arith.constant 0 : i32
    %2 = arith.cmpi ne, %1, %c0_i32_0 : i32
    scf.if %2 {
      %cst_16 = arith.constant 0.000000e+00 : f32
      %20 = vector.broadcast %cst_16 : f32 to vector<16x32xf32>
      %c0_17 = arith.constant 0 : index
      %c0_18 = arith.constant 0 : index
      %21 = vector.load %arg10[%c0_17, %c0_18] : memref<16x32xf32, #tpu.memory_space<vmem>>, vector<16x32xf32>
      tpu.vector_store %arg10[%c0_17, %c0_18], %20 {strides = array<i32>} : memref<16x32xf32, #tpu.memory_space<vmem>>, vector<16x32xf32>,
    } else {
    }
    %c0 = arith.constant 0 : index
    %c0_1 = arith.constant 0 : index
    %3 = vector.load %arg2[%c0, %c0_1] : memref<16x32xbf16, #tpu.memory_space<vmem>>, vector<16x32xbf16>
    %c0_2 = arith.constant 0 : index
    %c0_3 = arith.constant 0 : index
    %4 = vector.load %arg3[%c0_2, %c0_3] : memref<32x64xbf16, #tpu.memory_space<vmem>>, vector<32x64xbf16>
    %cst = arith.constant dense<0.000000e+00> : vector<16x64xf32>
    %5 = tpu.matmul %3, %4, %cst {dimension_numbers = #tpu.dot_dimension_numbers<[1], [0], [0], [1], [0, 0, 1, 1], [], []>} : vector<16x32xbf16>, vector<32x64xbf16>, vector<16x64xf32> -> vector<16x64xf32>
    %c0_4 = arith.constant 0 : index
    %c0_5 = arith.constant 0 : index
    %6 = vector.load %arg4[%c0_4, %c0_5] : memref<1x64xf32, #tpu.memory_space<vmem>>, vector<1x64xf32>
    %7 = vector.broadcast %6 : vector<1x64xf32> to vector<16x64xf32>
    %8 = arith.addf %5, %7 : vector<16x64xf32>
    %cst_6 = arith.constant 0.000000e+00 : f32
    %9 = vector.broadcast %cst_6 : f32 to vector<16x64xf32>
    %10 = arith.maximumf %8, %9 : vector<16x64xf32>
    %c0_7 = arith.constant 0 : index
    %c0_8 = arith.constant 0 : index
    %11 = vector.load %arg10[%c0_7, %c0_8] : memref<16x32xf32, #tpu.memory_space<vmem>>, vector<16x32xf32>
    %12 = arith.truncf %10 : vector<16x64xf32> to vector<16x64xbf16>
    %c0_9 = arith.constant 0 : index
    %c0_10 = arith.constant 0 : index
    %13 = vector.load %arg5[%c0_9, %c0_10] : memref<64x32xbf16, #tpu.memory_space<vmem>>, vector<64x32xbf16>
    %cst_11 = arith.constant dense<0.000000e+00> : vector<16x32xf32>
    %14 = tpu.matmul %12, %13, %cst_11 {dimension_numbers = #tpu.dot_dimension_numbers<[1], [0], [0], [1], [0, 0, 1, 1], [], []>} : vector<16x64xbf16>, vector<64x32xbf16>, vector<16x32xf32> -> vector<16x32xf32>
    %15 = arith.addf %11, %14 : vector<16x32xf32>
    %c0_12 = arith.constant 0 : index
    %c0_13 = arith.constant 0 : index
    %16 = vector.load %arg10[%c0_12, %c0_13] : memref<16x32xf32, #tpu.memory_space<vmem>>, vector<16x32xf32>
    tpu.vector_store %arg10[%c0_12, %c0_13], %15 {strides = array<i32>} : memref<16x32xf32, #tpu.memory_space<vmem>>, vector<16x32xf32>,
    %c0_i32_14 = arith.constant 0 : i32
    %17 = arith.cmpi eq, %arg1, %c0_i32_14 : i32
    %18 = arith.extui %17 : i1 to i32
    %c0_i32_15 = arith.constant 0 : i32
    %19 = arith.cmpi ne, %18, %c0_i32_15 : i32
    scf.if %19 {
      %c0_16 = arith.constant 0 : index
      %c0_17 = arith.constant 0 : index
      %20 = vector.load %arg10[%c0_16, %c0_17] : memref<16x32xf32, #tpu.memory_space<vmem>>, vector<16x32xf32>
      %c0_18 = arith.constant 0 : index
      %c0_19 = arith.constant 0 : index
      %21 = vector.load %arg6[%c0_18, %c0_19] : memref<1x32xf32, #tpu.memory_space<vmem>>, vector<1x32xf32>
      %22 = vector.broadcast %21 : vector<1x32xf32> to vector<16x32xf32>
      %23 = arith.addf %20, %22 : vector<16x32xf32>
      %24 = arith.extf %3 : vector<16x32xbf16> to vector<16x32xf32>
      %25 = arith.addf %24, %23 : vector<16x32xf32>
      %c0_20 = arith.constant 0 : index
      %c0_21 = arith.constant 0 : index
      %26 = vector.load %arg7[%c0_20, %c0_21] : memref<1x32xf32, #tpu.memory_space<vmem>>, vector<1x32xf32>
      %c0_22 = arith.constant 0 : index
      %c0_23 = arith.constant 0 : index
      %27 = vector.load %arg8[%c0_22, %c0_23] : memref<1x32xf32, #tpu.memory_space<vmem>>, vector<1x32xf32>
      %cst_24 = arith.constant dense<0.000000e+00> : vector<16xf32>
      %28 = vector.multi_reduction <add>, %25, %cst_24 [1] : vector<16x32xf32> to vector<16xf32>
      %29 = vector.shape_cast %28 : vector<16xf32> to vector<16x1xf32>
      %cst_25 = arith.constant 3.200000e+01 : f32
      %30 = vector.broadcast %cst_25 : f32 to vector<16x1xf32>
      %31 = arith.divf %29, %30 : vector<16x1xf32>
      %32 = vector.broadcast %31 : vector<16x1xf32> to vector<16x32xf32>
      %33 = arith.subf %25, %32 : vector<16x32xf32>
      %34 = arith.mulf %33, %33 : vector<16x32xf32>
      %cst_26 = arith.constant dense<0.000000e+00> : vector<16xf32>
      %35 = vector.multi_reduction <add>, %34, %cst_26 [1] : vector<16x32xf32> to vector<16xf32>
      %36 = vector.shape_cast %35 : vector<16xf32> to vector<16x1xf32>
      %cst_27 = arith.constant 3.200000e+01 : f32
      %37 = vector.broadcast %cst_27 : f32 to vector<16x1xf32>
      %38 = arith.divf %36, %37 : vector<16x1xf32>
      %39 = vector.broadcast %31 : vector<16x1xf32> to vector<16x32xf32>
      %40 = arith.subf %25, %39 : vector<16x32xf32>
      %cst_28 = arith.constant 9.99999974E-6 : f32
      %41 = vector.broadcast %cst_28 : f32 to vector<16x1xf32>
      %42 = arith.addf %38, %41 : vector<16x1xf32>
      %43 = math.rsqrt %42 : vector<16x1xf32>
      %44 = vector.broadcast %43 : vector<16x1xf32> to vector<16x32xf32>
      %45 = arith.mulf %40, %44 : vector<16x32xf32>
      %46 = vector.broadcast %26 : vector<1x32xf32> to vector<16x32xf32>
      %47 = arith.mulf %45, %46 : vector<16x32xf32>
      %48 = vector.broadcast %27 : vector<1x32xf32> to vector<16x32xf32>
      %49 = arith.addf %47, %48 : vector<16x32xf32>
      %50 = arith.truncf %49 : vector<16x32xf32> to vector<16x32xbf16>
      %c0_29 = arith.constant 0 : index
      %c0_30 = arith.constant 0 : index
      %51 = vector.load %arg9[%c0_29, %c0_30] : memref<16x32xbf16, #tpu.memory_space<vmem>>, vector<16x32xbf16>
      tpu.vector_store %arg9[%c0_29, %c0_30], %50 {strides = array<i32>} : memref<16x32xbf16, #tpu.memory_space<vmem>>, vector<16x32xbf16>,
    } else {
    }
    return
  }
  func.func @transform_0(%arg0: i32, %arg1: i32) -> (i32, i32) {
    %c0_i32 = arith.constant 0 : i32
    %c0_i32_0 = arith.constant 0 : i32
    return %arg0, %c0_i32 : i32, i32
  }
  func.func @transform_1(%arg0: i32, %arg1: i32) -> (i32, i32) {
    %c0_i32 = arith.constant 0 : i32
    %c0_i32_0 = arith.constant 0 : i32
    %c0_i32_1 = arith.constant 0 : i32
    return %c0_i32, %c0_i32_0 : i32, i32
  }
  func.func @transform_2(%arg0: i32, %arg1: i32) -> (i32, i32) {
    %c0_i32 = arith.constant 0 : i32
    %c0_i32_0 = arith.constant 0 : i32
    %c0_i32_1 = arith.constant 0 : i32
    return %c0_i32, %c0_i32_0 : i32, i32
  }
  func.func @transform_3(%arg0: i32, %arg1: i32) -> (i32, i32) {
    %c0_i32 = arith.constant 0 : i32
    %c0_i32_0 = arith.constant 0 : i32
    %c0_i32_1 = arith.constant 0 : i32
    return %c0_i32, %c0_i32_0 : i32, i32
  }
  func.func @transform_4(%arg0: i32, %arg1: i32) -> (i32, i32) {
    %c0_i32 = arith.constant 0 : i32
    %c0_i32_0 = arith.constant 0 : i32
    %c0_i32_1 = arith.constant 0 : i32
    return %c0_i32, %c0_i32_0 : i32, i32
  }
  func.func @transform_5(%arg0: i32, %arg1: i32) -> (i32, i32) {
    %c0_i32 = arith.constant 0 : i32
    %c0_i32_0 = arith.constant 0 : i32
    %c0_i32_1 = arith.constant 0 : i32
    return %c0_i32, %c0_i32_0 : i32, i32
  }
  func.func @transform_6(%arg0: i32, %arg1: i32) -> (i32, i32) {
    %c0_i32 = arith.constant 0 : i32
    %c0_i32_0 = arith.constant 0 : i32
    %c0_i32_1 = arith.constant 0 : i32
    return %c0_i32, %c0_i32_0 : i32, i32
  }
  func.func @transform_7(%arg0: i32, %arg1: i32) -> (i32, i32) {
    %c0_i32 = arith.constant 0 : i32
    %c0_i32_0 = arith.constant 0 : i32
    return %arg0, %c0_i32 : i32, i32
  }
}

module attributes {stable_mosaic.version = 11 : i64} {
  func.func @_attn_block_kernel(%arg0: i32, %arg1: i32, %arg2: memref<1x8x32xbf16, #tpu.memory_space<vmem>>, %arg3: memref<1x8x32xbf16, #tpu.memory_space<vmem>>, %arg4: memref<32x32xbf16, #tpu.memory_space<vmem>>, %arg5: memref<1x32xf32, #tpu.memory_space<vmem>>, %arg6: memref<32x32xbf16, #tpu.memory_space<vmem>>, %arg7: memref<1x32xf32, #tpu.memory_space<vmem>>, %arg8: memref<32x32xbf16, #tpu.memory_space<vmem>>, %arg9: memref<1x32xf32, #tpu.memory_space<vmem>>, %arg10: memref<32x32xbf16, #tpu.memory_space<vmem>>, %arg11: memref<1x32xf32, #tpu.memory_space<vmem>>, %arg12: memref<1x32xf32, #tpu.memory_space<vmem>>, %arg13: memref<1x32xf32, #tpu.memory_space<vmem>>, %arg14: memref<1x8x32xbf16, #tpu.memory_space<vmem>>, %arg15: memref<8x32xbf16, #tpu.memory_space<vmem>>, %arg16: memref<8x32xbf16, #tpu.memory_space<vmem>>, %arg17: memref<8x32xf32, #tpu.memory_space<vmem>>) attributes {dimension_semantics = [#tpu.dimension_semantics<parallel>, #tpu.dimension_semantics<arbitrary>], iteration_bounds = array<i64: 2, 1>, scalar_prefetch = 0 : i64, scratch_operands = 3 : i64, tpu.core_type = #tpu.core_type<tc>, window_params = [{transform_indices = @transform_0, window_bounds = array<i64: 1, 8, 32>}, {transform_indices = @transform_1, window_bounds = array<i64: 1, 8, 32>}, {pipeline_mode = #tpu.pipeline_mode<synchronous>, transform_indices = @transform_2, window_bounds = array<i64: 32, 32>}, {pipeline_mode = #tpu.pipeline_mode<synchronous>, transform_indices = @transform_3, window_bounds = array<i64: 1, 32>}, {pipeline_mode = #tpu.pipeline_mode<synchronous>, transform_indices = @transform_4, window_bounds = array<i64: 32, 32>}, {pipeline_mode = #tpu.pipeline_mode<synchronous>, transform_indices = @transform_5, window_bounds = array<i64: 1, 32>}, {pipeline_mode = #tpu.pipeline_mode<synchronous>, transform_indices = @transform_6, window_bounds = array<i64: 32, 32>}, {pipeline_mode = #tpu.pipeline_mode<synchronous>, transform_indices = @transform_7, window_bounds = array<i64: 1, 32>}, {pipeline_mode = #tpu.pipeline_mode<synchronous>, transform_indices = @transform_8, window_bounds = array<i64: 32, 32>}, {pipeline_mode = #tpu.pipeline_mode<synchronous>, transform_indices = @transform_9, window_bounds = array<i64: 1, 32>}, {pipeline_mode = #tpu.pipeline_mode<synchronous>, transform_indices = @transform_10, window_bounds = array<i64: 1, 32>}, {pipeline_mode = #tpu.pipeline_mode<synchronous>, transform_indices = @transform_11, window_bounds = array<i64: 1, 32>}, {transform_indices = @transform_12, window_bounds = array<i64: 1, 8, 32>}]} {
    %c0_i32 = arith.constant 0 : i32
    %0 = arith.cmpi eq, %arg1, %c0_i32 : i32
    %1 = arith.extui %0 : i1 to i32
    %c0_i32_0 = arith.constant 0 : i32
    %2 = arith.cmpi ne, %1, %c0_i32_0 : i32
    scf.if %2 {
      %c0_51 = arith.constant 0 : index
      %c0_52 = arith.constant 0 : index
      %c0_53 = arith.constant 0 : index
      %121 = vector.load %arg3[%c0_51, %c0_52, %c0_53] : memref<1x8x32xbf16, #tpu.memory_space<vmem>>, vector<1x8x32xbf16>
      %122 = vector.shape_cast %121 : vector<1x8x32xbf16> to vector<8x32xbf16>
      %c0_54 = arith.constant 0 : index
      %c0_55 = arith.constant 0 : index
      %123 = vector.load %arg6[%c0_54, %c0_55] : memref<32x32xbf16, #tpu.memory_space<vmem>>, vector<32x32xbf16>
      %cst_56 = arith.constant dense<0.000000e+00> : vector<8x32xf32>
      %124 = tpu.matmul %122, %123, %cst_56 {dimension_numbers = #tpu.dot_dimension_numbers<[1], [0], [0], [1], [0, 0, 1, 1], [], []>} : vector<8x32xbf16>, vector<32x32xbf16>, vector<8x32xf32> -> vector<8x32xf32>
      %c0_57 = arith.constant 0 : index
      %c0_58 = arith.constant 0 : index
      %125 = vector.load %arg7[%c0_57, %c0_58] : memref<1x32xf32, #tpu.memory_space<vmem>>, vector<1x32xf32>
      %126 = vector.broadcast %125 : vector<1x32xf32> to vector<8x32xf32>
      %127 = arith.addf %124, %126 : vector<8x32xf32>
      %128 = arith.truncf %127 : vector<8x32xf32> to vector<8x32xbf16>
      %c0_59 = arith.constant 0 : index
      %c0_60 = arith.constant 0 : index
      %129 = vector.load %arg15[%c0_59, %c0_60] : memref<8x32xbf16, #tpu.memory_space<vmem>>, vector<8x32xbf16>
      tpu.vector_store %arg15[%c0_59, %c0_60], %128 {strides = array<i32>} : memref<8x32xbf16, #tpu.memory_space<vmem>>, vector<8x32xbf16>,
      %c0_61 = arith.constant 0 : index
      %c0_62 = arith.constant 0 : index
      %130 = vector.load %arg8[%c0_61, %c0_62] : memref<32x32xbf16, #tpu.memory_space<vmem>>, vector<32x32xbf16>
      %cst_63 = arith.constant dense<0.000000e+00> : vector<8x32xf32>
      %131 = tpu.matmul %122, %130, %cst_63 {dimension_numbers = #tpu.dot_dimension_numbers<[1], [0], [0], [1], [0, 0, 1, 1], [], []>} : vector<8x32xbf16>, vector<32x32xbf16>, vector<8x32xf32> -> vector<8x32xf32>
      %c0_64 = arith.constant 0 : index
      %c0_65 = arith.constant 0 : index
      %132 = vector.load %arg9[%c0_64, %c0_65] : memref<1x32xf32, #tpu.memory_space<vmem>>, vector<1x32xf32>
      %133 = vector.broadcast %132 : vector<1x32xf32> to vector<8x32xf32>
      %134 = arith.addf %131, %133 : vector<8x32xf32>
      %135 = arith.truncf %134 : vector<8x32xf32> to vector<8x32xbf16>
      %c0_66 = arith.constant 0 : index
      %c0_67 = arith.constant 0 : index
      %136 = vector.load %arg16[%c0_66, %c0_67] : memref<8x32xbf16, #tpu.memory_space<vmem>>, vector<8x32xbf16>
      tpu.vector_store %arg16[%c0_66, %c0_67], %135 {strides = array<i32>} : memref<8x32xbf16, #tpu.memory_space<vmem>>, vector<8x32xbf16>,
    } else {
    }
    %c0 = arith.constant 0 : index
    %c0_1 = arith.constant 0 : index
    %c0_2 = arith.constant 0 : index
    %3 = vector.load %arg2[%c0, %c0_1, %c0_2] : memref<1x8x32xbf16, #tpu.memory_space<vmem>>, vector<1x8x32xbf16>
    %4 = vector.shape_cast %3 : vector<1x8x32xbf16> to vector<8x32xbf16>
    %c0_3 = arith.constant 0 : index
    %c0_4 = arith.constant 0 : index
    %5 = vector.load %arg4[%c0_3, %c0_4] : memref<32x32xbf16, #tpu.memory_space<vmem>>, vector<32x32xbf16>
    %cst = arith.constant dense<0.000000e+00> : vector<8x32xf32>
    %6 = tpu.matmul %4, %5, %cst {dimension_numbers = #tpu.dot_dimension_numbers<[1], [0], [0], [1], [0, 0, 1, 1], [], []>} : vector<8x32xbf16>, vector<32x32xbf16>, vector<8x32xf32> -> vector<8x32xf32>
    %c0_5 = arith.constant 0 : index
    %c0_6 = arith.constant 0 : index
    %7 = vector.load %arg5[%c0_5, %c0_6] : memref<1x32xf32, #tpu.memory_space<vmem>>, vector<1x32xf32>
    %8 = vector.broadcast %7 : vector<1x32xf32> to vector<8x32xf32>
    %9 = arith.addf %6, %8 : vector<8x32xf32>
    %c0_7 = arith.constant 0 : index
    %c0_8 = arith.constant 0 : index
    %10 = vector.load %arg15[%c0_7, %c0_8] : memref<8x32xbf16, #tpu.memory_space<vmem>>, vector<8x32xbf16>
    %c0_9 = arith.constant 0 : index
    %c0_10 = arith.constant 0 : index
    %11 = vector.load %arg16[%c0_9, %c0_10] : memref<8x32xbf16, #tpu.memory_space<vmem>>, vector<8x32xbf16>
    %12 = vector.extract_strided_slice %9 {offsets = [0, 0], sizes = [8, 8], strides = [1, 1]} : vector<8x32xf32> to vector<8x8xf32>
    %13 = arith.truncf %12 : vector<8x8xf32> to vector<8x8xbf16>
    %14 = vector.extract_strided_slice %10 {offsets = [0, 0], sizes = [8, 8], strides = [1, 1]} : vector<8x32xbf16> to vector<8x8xbf16>
    %15 = vector.extract_strided_slice %11 {offsets = [0, 0], sizes = [8, 8], strides = [1, 1]} : vector<8x32xbf16> to vector<8x8xbf16>
    %cst_11 = arith.constant dense<0.000000e+00> : vector<8x8xf32>
    %16 = tpu.matmul %13, %14, %cst_11 {dimension_numbers = #tpu.dot_dimension_numbers<[1], [1], [0], [0], [0, 0, 1, 0], [], []>} : vector<8x8xbf16>, vector<8x8xbf16>, vector<8x8xf32> -> vector<8x8xf32>
    %cst_12 = arith.constant dense<0xFF800000> : vector<8xf32>
    %17 = vector.multi_reduction <maximumf>, %16, %cst_12 [1] : vector<8x8xf32> to vector<8xf32>
    %18 = vector.shape_cast %17 : vector<8xf32> to vector<8x1xf32>
    %19 = vector.broadcast %18 : vector<8x1xf32> to vector<8x8xf32>
    %20 = arith.subf %16, %19 : vector<8x8xf32>
    %21 = math.exp %20 : vector<8x8xf32>
    %cst_13 = arith.constant dense<0.000000e+00> : vector<8xf32>
    %22 = vector.multi_reduction <add>, %21, %cst_13 [1] : vector<8x8xf32> to vector<8xf32>
    %23 = vector.shape_cast %22 : vector<8xf32> to vector<8x1xf32>
    %24 = tpu.reciprocal %23 {approx = true} : vector<8x1xf32> -> vector<8x1xf32>
    %25 = vector.broadcast %24 : vector<8x1xf32> to vector<8x8xf32>
    %26 = arith.mulf %21, %25 : vector<8x8xf32>
    %27 = arith.truncf %26 : vector<8x8xf32> to vector<8x8xbf16>
    %cst_14 = arith.constant dense<0.000000e+00> : vector<8x8xf32>
    %28 = tpu.matmul %27, %15, %cst_14 {dimension_numbers = #tpu.dot_dimension_numbers<[1], [0], [0], [1], [0, 0, 1, 1], [], []>} : vector<8x8xbf16>, vector<8x8xbf16>, vector<8x8xf32> -> vector<8x8xf32>
    %c0_15 = arith.constant 0 : index
    %c0_16 = arith.constant 0 : index
    %29 = vector.load %arg17[%c0_15, %c0_16] : memref<8x32xf32, #tpu.memory_space<vmem>>, vector<8x8xf32>
    tpu.vector_store %arg17[%c0_15, %c0_16], %28 {strides = array<i32>} : memref<8x32xf32, #tpu.memory_space<vmem>>, vector<8x8xf32>,
    %30 = vector.extract_strided_slice %9 {offsets = [0, 8], sizes = [8, 8], strides = [1, 1]} : vector<8x32xf32> to vector<8x8xf32>
    %31 = arith.truncf %30 : vector<8x8xf32> to vector<8x8xbf16>
    %32 = vector.extract_strided_slice %10 {offsets = [0, 8], sizes = [8, 8], strides = [1, 1]} : vector<8x32xbf16> to vector<8x8xbf16>
    %33 = vector.extract_strided_slice %11 {offsets = [0, 8], sizes = [8, 8], strides = [1, 1]} : vector<8x32xbf16> to vector<8x8xbf16>
    %cst_17 = arith.constant dense<0.000000e+00> : vector<8x8xf32>
    %34 = tpu.matmul %31, %32, %cst_17 {dimension_numbers = #tpu.dot_dimension_numbers<[1], [1], [0], [0], [0, 0, 1, 0], [], []>} : vector<8x8xbf16>, vector<8x8xbf16>, vector<8x8xf32> -> vector<8x8xf32>
    %cst_18 = arith.constant dense<0xFF800000> : vector<8xf32>
    %35 = vector.multi_reduction <maximumf>, %34, %cst_18 [1] : vector<8x8xf32> to vector<8xf32>
    %36 = vector.shape_cast %35 : vector<8xf32> to vector<8x1xf32>
    %37 = vector.broadcast %36 : vector<8x1xf32> to vector<8x8xf32>
    %38 = arith.subf %34, %37 : vector<8x8xf32>
    %39 = math.exp %38 : vector<8x8xf32>
    %cst_19 = arith.constant dense<0.000000e+00> : vector<8xf32>
    %40 = vector.multi_reduction <add>, %39, %cst_19 [1] : vector<8x8xf32> to vector<8xf32>
    %41 = vector.shape_cast %40 : vector<8xf32> to vector<8x1xf32>
    %42 = tpu.reciprocal %41 {approx = true} : vector<8x1xf32> -> vector<8x1xf32>
    %43 = vector.broadcast %42 : vector<8x1xf32> to vector<8x8xf32>
    %44 = arith.mulf %39, %43 : vector<8x8xf32>
    %45 = arith.truncf %44 : vector<8x8xf32> to vector<8x8xbf16>
    %cst_20 = arith.constant dense<0.000000e+00> : vector<8x8xf32>
    %46 = tpu.matmul %45, %33, %cst_20 {dimension_numbers = #tpu.dot_dimension_numbers<[1], [0], [0], [1], [0, 0, 1, 1], [], []>} : vector<8x8xbf16>, vector<8x8xbf16>, vector<8x8xf32> -> vector<8x8xf32>
    %c0_21 = arith.constant 0 : index
    %c8 = arith.constant 8 : index
    %47 = vector.load %arg17[%c0_21, %c8] : memref<8x32xf32, #tpu.memory_space<vmem>>, vector<8x8xf32>
    tpu.vector_store %arg17[%c0_21, %c8], %46 {strides = array<i32>} : memref<8x32xf32, #tpu.memory_space<vmem>>, vector<8x8xf32>,
    %48 = vector.extract_strided_slice %9 {offsets = [0, 16], sizes = [8, 8], strides = [1, 1]} : vector<8x32xf32> to vector<8x8xf32>
    %49 = arith.truncf %48 : vector<8x8xf32> to vector<8x8xbf16>
    %50 = vector.extract_strided_slice %10 {offsets = [0, 16], sizes = [8, 8], strides = [1, 1]} : vector<8x32xbf16> to vector<8x8xbf16>
    %51 = vector.extract_strided_slice %11 {offsets = [0, 16], sizes = [8, 8], strides = [1, 1]} : vector<8x32xbf16> to vector<8x8xbf16>
    %cst_22 = arith.constant dense<0.000000e+00> : vector<8x8xf32>
    %52 = tpu.matmul %49, %50, %cst_22 {dimension_numbers = #tpu.dot_dimension_numbers<[1], [1], [0], [0], [0, 0, 1, 0], [], []>} : vector<8x8xbf16>, vector<8x8xbf16>, vector<8x8xf32> -> vector<8x8xf32>
    %cst_23 = arith.constant dense<0xFF800000> : vector<8xf32>
    %53 = vector.multi_reduction <maximumf>, %52, %cst_23 [1] : vector<8x8xf32> to vector<8xf32>
    %54 = vector.shape_cast %53 : vector<8xf32> to vector<8x1xf32>
    %55 = vector.broadcast %54 : vector<8x1xf32> to vector<8x8xf32>
    %56 = arith.subf %52, %55 : vector<8x8xf32>
    %57 = math.exp %56 : vector<8x8xf32>
    %cst_24 = arith.constant dense<0.000000e+00> : vector<8xf32>
    %58 = vector.multi_reduction <add>, %57, %cst_24 [1] : vector<8x8xf32> to vector<8xf32>
    %59 = vector.shape_cast %58 : vector<8xf32> to vector<8x1xf32>
    %60 = tpu.reciprocal %59 {approx = true} : vector<8x1xf32> -> vector<8x1xf32>
    %61 = vector.broadcast %60 : vector<8x1xf32> to vector<8x8xf32>
    %62 = arith.mulf %57, %61 : vector<8x8xf32>
    %63 = arith.truncf %62 : vector<8x8xf32> to vector<8x8xbf16>
    %cst_25 = arith.constant dense<0.000000e+00> : vector<8x8xf32>
    %64 = tpu.matmul %63, %51, %cst_25 {dimension_numbers = #tpu.dot_dimension_numbers<[1], [0], [0], [1], [0, 0, 1, 1], [], []>} : vector<8x8xbf16>, vector<8x8xbf16>, vector<8x8xf32> -> vector<8x8xf32>
    %c0_26 = arith.constant 0 : index
    %c16 = arith.constant 16 : index
    %65 = vector.load %arg17[%c0_26, %c16] : memref<8x32xf32, #tpu.memory_space<vmem>>, vector<8x8xf32>
    tpu.vector_store %arg17[%c0_26, %c16], %64 {strides = array<i32>} : memref<8x32xf32, #tpu.memory_space<vmem>>, vector<8x8xf32>,
    %66 = vector.extract_strided_slice %9 {offsets = [0, 24], sizes = [8, 8], strides = [1, 1]} : vector<8x32xf32> to vector<8x8xf32>
    %67 = arith.truncf %66 : vector<8x8xf32> to vector<8x8xbf16>
    %68 = vector.extract_strided_slice %10 {offsets = [0, 24], sizes = [8, 8], strides = [1, 1]} : vector<8x32xbf16> to vector<8x8xbf16>
    %69 = vector.extract_strided_slice %11 {offsets = [0, 24], sizes = [8, 8], strides = [1, 1]} : vector<8x32xbf16> to vector<8x8xbf16>
    %cst_27 = arith.constant dense<0.000000e+00> : vector<8x8xf32>
    %70 = tpu.matmul %67, %68, %cst_27 {dimension_numbers = #tpu.dot_dimension_numbers<[1], [1], [0], [0], [0, 0, 1, 0], [], []>} : vector<8x8xbf16>, vector<8x8xbf16>, vector<8x8xf32> -> vector<8x8xf32>
    %cst_28 = arith.constant dense<0xFF800000> : vector<8xf32>
    %71 = vector.multi_reduction <maximumf>, %70, %cst_28 [1] : vector<8x8xf32> to vector<8xf32>
    %72 = vector.shape_cast %71 : vector<8xf32> to vector<8x1xf32>
    %73 = vector.broadcast %72 : vector<8x1xf32> to vector<8x8xf32>
    %74 = arith.subf %70, %73 : vector<8x8xf32>
    %75 = math.exp %74 : vector<8x8xf32>
    %cst_29 = arith.constant dense<0.000000e+00> : vector<8xf32>
    %76 = vector.multi_reduction <add>, %75, %cst_29 [1] : vector<8x8xf32> to vector<8xf32>
    %77 = vector.shape_cast %76 : vector<8xf32> to vector<8x1xf32>
    %78 = tpu.reciprocal %77 {approx = true} : vector<8x1xf32> -> vector<8x1xf32>
    %79 = vector.broadcast %78 : vector<8x1xf32> to vector<8x8xf32>
    %80 = arith.mulf %75, %79 : vector<8x8xf32>
    %81 = arith.truncf %80 : vector<8x8xf32> to vector<8x8xbf16>
    %cst_30 = arith.constant dense<0.000000e+00> : vector<8x8xf32>
    %82 = tpu.matmul %81, %69, %cst_30 {dimension_numbers = #tpu.dot_dimension_numbers<[1], [0], [0], [1], [0, 0, 1, 1], [], []>} : vector<8x8xbf16>, vector<8x8xbf16>, vector<8x8xf32> -> vector<8x8xf32>
    %c0_31 = arith.constant 0 : index
    %c24 = arith.constant 24 : index
    %83 = vector.load %arg17[%c0_31, %c24] : memref<8x32xf32, #tpu.memory_space<vmem>>, vector<8x8xf32>
    tpu.vector_store %arg17[%c0_31, %c24], %82 {strides = array<i32>} : memref<8x32xf32, #tpu.memory_space<vmem>>, vector<8x8xf32>,
    %c0_32 = arith.constant 0 : index
    %c0_33 = arith.constant 0 : index
    %84 = vector.load %arg17[%c0_32, %c0_33] : memref<8x32xf32, #tpu.memory_space<vmem>>, vector<8x32xf32>
    %85 = arith.truncf %84 : vector<8x32xf32> to vector<8x32xbf16>
    %c0_34 = arith.constant 0 : index
    %c0_35 = arith.constant 0 : index
    %86 = vector.load %arg10[%c0_34, %c0_35] : memref<32x32xbf16, #tpu.memory_space<vmem>>, vector<32x32xbf16>
    %cst_36 = arith.constant dense<0.000000e+00> : vector<8x32xf32>
    %87 = tpu.matmul %85, %86, %cst_36 {dimension_numbers = #tpu.dot_dimension_numbers<[1], [0], [0], [1], [0, 0, 1, 1], [], []>} : vector<8x32xbf16>, vector<32x32xbf16>, vector<8x32xf32> -> vector<8x32xf32>
    %c0_37 = arith.constant 0 : index
    %c0_38 = arith.constant 0 : index
    %88 = vector.load %arg11[%c0_37, %c0_38] : memref<1x32xf32, #tpu.memory_space<vmem>>, vector<1x32xf32>
    %89 = vector.broadcast %88 : vector<1x32xf32> to vector<8x32xf32>
    %90 = arith.addf %87, %89 : vector<8x32xf32>
    %91 = arith.extf %4 : vector<8x32xbf16> to vector<8x32xf32>
    %92 = arith.addf %91, %90 : vector<8x32xf32>
    %c0_39 = arith.constant 0 : index
    %c0_40 = arith.constant 0 : index
    %93 = vector.load %arg12[%c0_39, %c0_40] : memref<1x32xf32, #tpu.memory_space<vmem>>, vector<1x32xf32>
    %c0_41 = arith.constant 0 : index
    %c0_42 = arith.constant 0 : index
    %94 = vector.load %arg13[%c0_41, %c0_42] : memref<1x32xf32, #tpu.memory_space<vmem>>, vector<1x32xf32>
    %cst_43 = arith.constant dense<0.000000e+00> : vector<8xf32>
    %95 = vector.multi_reduction <add>, %92, %cst_43 [1] : vector<8x32xf32> to vector<8xf32>
    %96 = vector.shape_cast %95 : vector<8xf32> to vector<8x1xf32>
    %cst_44 = arith.constant 3.200000e+01 : f32
    %97 = vector.broadcast %cst_44 : f32 to vector<8x1xf32>
    %98 = arith.divf %96, %97 : vector<8x1xf32>
    %99 = vector.broadcast %98 : vector<8x1xf32> to vector<8x32xf32>
    %100 = arith.subf %92, %99 : vector<8x32xf32>
    %101 = arith.mulf %100, %100 : vector<8x32xf32>
    %cst_45 = arith.constant dense<0.000000e+00> : vector<8xf32>
    %102 = vector.multi_reduction <add>, %101, %cst_45 [1] : vector<8x32xf32> to vector<8xf32>
    %103 = vector.shape_cast %102 : vector<8xf32> to vector<8x1xf32>
    %cst_46 = arith.constant 3.200000e+01 : f32
    %104 = vector.broadcast %cst_46 : f32 to vector<8x1xf32>
    %105 = arith.divf %103, %104 : vector<8x1xf32>
    %106 = vector.broadcast %98 : vector<8x1xf32> to vector<8x32xf32>
    %107 = arith.subf %92, %106 : vector<8x32xf32>
    %cst_47 = arith.constant 9.99999974E-6 : f32
    %108 = vector.broadcast %cst_47 : f32 to vector<8x1xf32>
    %109 = arith.addf %105, %108 : vector<8x1xf32>
    %110 = math.rsqrt %109 : vector<8x1xf32>
    %111 = vector.broadcast %110 : vector<8x1xf32> to vector<8x32xf32>
    %112 = arith.mulf %107, %111 : vector<8x32xf32>
    %113 = vector.broadcast %93 : vector<1x32xf32> to vector<8x32xf32>
    %114 = arith.mulf %112, %113 : vector<8x32xf32>
    %115 = vector.broadcast %94 : vector<1x32xf32> to vector<8x32xf32>
    %116 = arith.addf %114, %115 : vector<8x32xf32>
    %117 = arith.truncf %116 : vector<8x32xf32> to vector<8x32xbf16>
    %c0_48 = arith.constant 0 : index
    %c0_49 = arith.constant 0 : index
    %c0_50 = arith.constant 0 : index
    %118 = vector.load %arg14[%c0_48, %c0_49, %c0_50] : memref<1x8x32xbf16, #tpu.memory_space<vmem>>, vector<1x8x32xbf16>
    %119 = vector.shape_cast %118 : vector<1x8x32xbf16> to vector<8x32xbf16>
    %120 = vector.shape_cast %117 : vector<8x32xbf16> to vector<1x8x32xbf16>
    tpu.vector_store %arg14[%c0_48, %c0_49, %c0_50], %120 {strides = array<i32>} : memref<1x8x32xbf16, #tpu.memory_space<vmem>>, vector<1x8x32xbf16>,
    return
  }
  func.func @transform_0(%arg0: i32, %arg1: i32) -> (i32, i32, i32) {
    %c0_i32 = arith.constant 0 : i32
    %c0_i32_0 = arith.constant 0 : i32
    return %arg0, %arg1, %c0_i32 : i32, i32, i32
  }
  func.func @transform_1(%arg0: i32, %arg1: i32) -> (i32, i32, i32) {
    %c0_i32 = arith.constant 0 : i32
    %c0_i32_0 = arith.constant 0 : i32
    %c0_i32_1 = arith.constant 0 : i32
    return %arg0, %c0_i32, %c0_i32_0 : i32, i32, i32
  }
  func.func @transform_2(%arg0: i32, %arg1: i32) -> (i32, i32) {
    %c0_i32 = arith.constant 0 : i32
    %c0_i32_0 = arith.constant 0 : i32
    %c0_i32_1 = arith.constant 0 : i32
    return %c0_i32, %c0_i32_0 : i32, i32
  }
  func.func @transform_3(%arg0: i32, %arg1: i32) -> (i32, i32) {
    %c0_i32 = arith.constant 0 : i32
    %c0_i32_0 = arith.constant 0 : i32
    %c0_i32_1 = arith.constant 0 : i32
    return %c0_i32, %c0_i32_0 : i32, i32
  }
  func.func @transform_4(%arg0: i32, %arg1: i32) -> (i32, i32) {
    %c0_i32 = arith.constant 0 : i32
    %c0_i32_0 = arith.constant 0 : i32
    %c0_i32_1 = arith.constant 0 : i32
    return %c0_i32, %c0_i32_0 : i32, i32
  }
  func.func @transform_5(%arg0: i32, %arg1: i32) -> (i32, i32) {
    %c0_i32 = arith.constant 0 : i32
    %c0_i32_0 = arith.constant 0 : i32
    %c0_i32_1 = arith.constant 0 : i32
    return %c0_i32, %c0_i32_0 : i32, i32
  }
  func.func @transform_6(%arg0: i32, %arg1: i32) -> (i32, i32) {
    %c0_i32 = arith.constant 0 : i32
    %c0_i32_0 = arith.constant 0 : i32
    %c0_i32_1 = arith.constant 0 : i32
    return %c0_i32, %c0_i32_0 : i32, i32
  }
  func.func @transform_7(%arg0: i32, %arg1: i32) -> (i32, i32) {
    %c0_i32 = arith.constant 0 : i32
    %c0_i32_0 = arith.constant 0 : i32
    %c0_i32_1 = arith.constant 0 : i32
    return %c0_i32, %c0_i32_0 : i32, i32
  }
  func.func @transform_8(%arg0: i32, %arg1: i32) -> (i32, i32) {
    %c0_i32 = arith.constant 0 : i32
    %c0_i32_0 = arith.constant 0 : i32
    %c0_i32_1 = arith.constant 0 : i32
    return %c0_i32, %c0_i32_0 : i32, i32
  }
  func.func @transform_9(%arg0: i32, %arg1: i32) -> (i32, i32) {
    %c0_i32 = arith.constant 0 : i32
    %c0_i32_0 = arith.constant 0 : i32
    %c0_i32_1 = arith.constant 0 : i32
    return %c0_i32, %c0_i32_0 : i32, i32
  }
  func.func @transform_10(%arg0: i32, %arg1: i32) -> (i32, i32) {
    %c0_i32 = arith.constant 0 : i32
    %c0_i32_0 = arith.constant 0 : i32
    %c0_i32_1 = arith.constant 0 : i32
    return %c0_i32, %c0_i32_0 : i32, i32
  }
  func.func @transform_11(%arg0: i32, %arg1: i32) -> (i32, i32) {
    %c0_i32 = arith.constant 0 : i32
    %c0_i32_0 = arith.constant 0 : i32
    %c0_i32_1 = arith.constant 0 : i32
    return %c0_i32, %c0_i32_0 : i32, i32
  }
  func.func @transform_12(%arg0: i32, %arg1: i32) -> (i32, i32, i32) {
    %c0_i32 = arith.constant 0 : i32
    %c0_i32_0 = arith.constant 0 : i32
    return %arg0, %arg1, %c0_i32 : i32, i32, i32
  }
}

module attributes {stable_mosaic.version = 11 : i64} {
  func.func @_ln_kernel(%arg0: i32, %arg1: memref<16x32xbf16, #tpu.memory_space<vmem>>, %arg2: memref<1x32xf32, #tpu.memory_space<vmem>>, %arg3: memref<1x32xf32, #tpu.memory_space<vmem>>, %arg4: memref<16x32xf32, #tpu.memory_space<vmem>>) attributes {dimension_semantics = [#tpu.dimension_semantics<parallel>], iteration_bounds = array<i64: 1>, scalar_prefetch = 0 : i64, scratch_operands = 0 : i64, tpu.core_type = #tpu.core_type<tc>, window_params = [{transform_indices = @transform_0, window_bounds = array<i64: 16, 32>}, {pipeline_mode = #tpu.pipeline_mode<synchronous>, transform_indices = @transform_1, window_bounds = array<i64: 1, 32>}, {pipeline_mode = #tpu.pipeline_mode<synchronous>, transform_indices = @transform_2, window_bounds = array<i64: 1, 32>}, {transform_indices = @transform_3, window_bounds = array<i64: 16, 32>}]} {
    %c0 = arith.constant 0 : index
    %c0_0 = arith.constant 0 : index
    %0 = vector.load %arg1[%c0, %c0_0] : memref<16x32xbf16, #tpu.memory_space<vmem>>, vector<16x32xbf16>
    %1 = arith.extf %0 : vector<16x32xbf16> to vector<16x32xf32>
    %c0_1 = arith.constant 0 : index
    %c0_2 = arith.constant 0 : index
    %2 = vector.load %arg2[%c0_1, %c0_2] : memref<1x32xf32, #tpu.memory_space<vmem>>, vector<1x32xf32>
    %c0_3 = arith.constant 0 : index
    %c0_4 = arith.constant 0 : index
    %3 = vector.load %arg3[%c0_3, %c0_4] : memref<1x32xf32, #tpu.memory_space<vmem>>, vector<1x32xf32>
    %cst = arith.constant dense<0.000000e+00> : vector<16xf32>
    %4 = vector.multi_reduction <add>, %1, %cst [1] : vector<16x32xf32> to vector<16xf32>
    %5 = vector.shape_cast %4 : vector<16xf32> to vector<16x1xf32>
    %cst_5 = arith.constant 3.200000e+01 : f32
    %6 = vector.broadcast %cst_5 : f32 to vector<16x1xf32>
    %7 = arith.divf %5, %6 : vector<16x1xf32>
    %8 = vector.broadcast %7 : vector<16x1xf32> to vector<16x32xf32>
    %9 = arith.subf %1, %8 : vector<16x32xf32>
    %10 = arith.mulf %9, %9 : vector<16x32xf32>
    %cst_6 = arith.constant dense<0.000000e+00> : vector<16xf32>
    %11 = vector.multi_reduction <add>, %10, %cst_6 [1] : vector<16x32xf32> to vector<16xf32>
    %12 = vector.shape_cast %11 : vector<16xf32> to vector<16x1xf32>
    %cst_7 = arith.constant 3.200000e+01 : f32
    %13 = vector.broadcast %cst_7 : f32 to vector<16x1xf32>
    %14 = arith.divf %12, %13 : vector<16x1xf32>
    %15 = vector.broadcast %7 : vector<16x1xf32> to vector<16x32xf32>
    %16 = arith.subf %1, %15 : vector<16x32xf32>
    %cst_8 = arith.constant 9.99999974E-6 : f32
    %17 = vector.broadcast %cst_8 : f32 to vector<16x1xf32>
    %18 = arith.addf %14, %17 : vector<16x1xf32>
    %19 = math.rsqrt %18 : vector<16x1xf32>
    %20 = vector.broadcast %19 : vector<16x1xf32> to vector<16x32xf32>
    %21 = arith.mulf %16, %20 : vector<16x32xf32>
    %22 = vector.broadcast %2 : vector<1x32xf32> to vector<16x32xf32>
    %23 = arith.mulf %21, %22 : vector<16x32xf32>
    %24 = vector.broadcast %3 : vector<1x32xf32> to vector<16x32xf32>
    %25 = arith.addf %23, %24 : vector<16x32xf32>
    %c0_9 = arith.constant 0 : index
    %c0_10 = arith.constant 0 : index
    %26 = vector.load %arg4[%c0_9, %c0_10] : memref<16x32xf32, #tpu.memory_space<vmem>>, vector<16x32xf32>
    tpu.vector_store %arg4[%c0_9, %c0_10], %25 {strides = array<i32>} : memref<16x32xf32, #tpu.memory_space<vmem>>, vector<16x32xf32>,
    return
  }
  func.func @transform_0(%arg0: i32) -> (i32, i32) {
    %c0_i32 = arith.constant 0 : i32
    %c0_i32_0 = arith.constant 0 : i32
    return %arg0, %c0_i32 : i32, i32
  }
  func.func @transform_1(%arg0: i32) -> (i32, i32) {
    %c0_i32 = arith.constant 0 : i32
    %c0_i32_0 = arith.constant 0 : i32
    %c0_i32_1 = arith.constant 0 : i32
    return %c0_i32, %c0_i32_0 : i32, i32
  }
  func.func @transform_2(%arg0: i32) -> (i32, i32) {
    %c0_i32 = arith.constant 0 : i32
    %c0_i32_0 = arith.constant 0 : i32
    %c0_i32_1 = arith.constant 0 : i32
    return %c0_i32, %c0_i32_0 : i32, i32
  }
  func.func @transform_3(%arg0: i32) -> (i32, i32) {
    %c0_i32 = arith.constant 0 : i32
    %c0_i32_0 = arith.constant 0 : i32
    return %arg0, %c0_i32 : i32, i32
  }
}

</mosaic_0001>

<bundles_post_ra>
// kernel: _lambda_.6
= control target key start
LH: loop header
LB: loop body
LE: loop exit
PB: predicated region body
PF: predicated region fallthrough
CT: control target
= control target key end

     0   :  { %12 = vsyncpa [#allocation4], 0  ;;  %s535_s0 = inlined_call_operand.vmem [shape: bf16[16,32], index: 0, kind: input, shape index: {}]   ;;  %s536_s1 = inlined_call_operand.vmem [shape: bf16[32,64], index: 1, kind: input, shape index: {}]   ;;  %s537_s2 = inlined_call_operand.hbm [shape: f32[1,64], index: 2, kind: input, shape index: {}]   ;;  %s538_s3 = inlined_call_operand.vmem [shape: bf16[64,32], index: 3, kind: input, shape index: {}]   ;;  %s539_s4 = inlined_call_operand.hbm [shape: f32[1,32], index: 4, kind: input, shape index: {}]   ;;  %s540_s5 = inlined_call_operand.hbm [shape: f32[1,32], index: 5, kind: input, shape index: {}]   ;;  %s541_s6 = inlined_call_operand.hbm [shape: f32[1,32], index: 6, kind: input, shape index: {}]   ;;  %s542_s7 = inlined_call_operand.vmem [shape: bf16[16,32], index: 7, kind: output, shape index: {}]  }
   0x1   :  { %13 = vsyncpa [#allocation6], 0  ;;  %s37_s26 = sshll.u32 %s539_s4, 4  ;;  %s38_s26 = int_to_ptr.hbm [resolvable:$true] %s37_s26 }
   0x2   :  { %14 = vsyncpa [#allocation9], 0  ;;  %s438_s27 = smov [#allocation5]   ;;  %s24_s8 = sshll.u32 %s537_s2, 4  ;;  %s25_s8 = int_to_ptr.hbm [resolvable:$true] %s24_s8 }
   0x3   :  { %s39_s28 = sshll.u32 %s438_s27, 4  ;;  %s439_s9 = smov [#allocation3]   ;;  %s40_s28 = int_to_ptr.vmem [resolvable:$true] %s39_s28 }
   0x4   :  { %42 = dma.hbm_to_vmem [thread:$0]  %s38_s26, 16, %s40_s28, [#allocation6]  }
   0x5   :  { %s26_s10 = sshll.u32 %s439_s9, 4  ;;  %s48_s13 = sshll.u32 %s540_s5, 4  ;;  %s27_s10 = int_to_ptr.vmem [resolvable:$true] %s26_s10  ;;  %s49_s13 = int_to_ptr.hbm [resolvable:$true] %s48_s13 }
   0x6   :  { %29 = dma.hbm_to_vmem [thread:$0]  %s25_s8, 16, %s27_s10, [#allocation4]  }
   0x7   :  { %s59_s15 = sshll.u32 %s541_s6, 4  ;;  %s440_s16 = smov [#allocation7]   ;;  %s60_s15 = int_to_ptr.hbm [resolvable:$true] %s59_s15 }
   0x8   :  { %s50_s17 = sshll.u32 %s440_s16, 4  ;;  %s441_s2 = smov [#allocation8]   ;;  %s51_s17 = int_to_ptr.vmem [resolvable:$true] %s50_s17 }
   0x9   :  { %53 = dma.hbm_to_vmem [thread:$0]  %s49_s13, 16, %s51_s17, [#allocation6]  }
   0xa   :  { %s61_s18 = sshll.u32 %s441_s2, 4  ;;  %s62_s18 = int_to_ptr.vmem [resolvable:$true] %s61_s18 }
   0xb   :  { %64 = dma.hbm_to_vmem [thread:$0]  %s60_s15, 16, %s62_s18, [#allocation9]  }
   0xc   :  { %432 = dma.done.wait [#allocation4], 16  }
   0xd   :  { %433 = vsyncadd [#allocation4], 4294967280 }
   0xe   :  { %434 = dma.done.wait [#allocation6], 32  }
   0xf   :  { %435 = vsyncadd [#allocation6], 4294967264 }
  0x10   :  { %436 = dma.done.wait [#allocation9], 16  }
  0x11   :  { %437 = vsyncadd [#allocation9], 4294967280  ;;  %v315_v0 = vld [vmem:[%s536_s1 + $0x8] sm:$0xff]  ;;  %v314_v1 = vld [vmem:[%s536_s1] sm:$0xff]  ;;  %vm86_vm0 = vcmask 261120   ;;  %v442_v7 = vmov 0.0  }
  0x12   :  { %126 = vmatpush.bf16.msra.mxu0 %v315_v0  ;;  %v313_v2 = vld [vmem:[%s535_s0] sm:$0xff]  ;;  %v319_v3 = vld [vmem:[%s538_s3 + $0x18] sm:$0xff]  ;;  %v318_v4 = vld [vmem:[%s538_s3 + $0x10] sm:$0xff]  ;;  %87 = vst.msk [vmem:[#allocation2] sm:$0xff] %vm86_vm0, %v442_v7  ;;  %vm171_vm1 = vcmask 523264   ;;  %v443_v34 = vmov 32.0  }
  0x13   :  { %179 = vmatpush.bf16.msra.mxu1 %v319_v3  ;;  %v317_v5 = vld [vmem:[%s538_s3 + $0x8] sm:$0xff]  ;;  %v316_v6 = vld [vmem:[%s538_s3] sm:$0xff]  ;;  %88 = vst.msk [vmem:[#allocation2 + $0x8] sm:$0xff] %vm86_vm0, %v442_v7  ;;  %v326_v9 = vld [vmem:[#allocation3] ss:$0 sm:$0xff]  ;;  %330 = vrcp.f32 %v443_v34  ;;  %vm273_vm7 = vcmask 257024  }
  0x14   :  { %v89_v20 = vld [vmem:[%s535_s0] sm:$0xff]   ;;  %v327_v21 = vld [vmem:[#allocation5] ss:$0 sm:$0xff] }
  0x15   :  { %v204_v24 = vunpack.c.l.bf16 %v89_v20  ;;  %v205_v29 = vunpack.c.h.bf16 %v89_v20 }
  0x16   :  { %127 = vmatpush.bf16.msra.mxu0 %v314_v1  ;;  %v328_v1 = vld [vmem:[#allocation7] ss:$0 sm:$0xff] }
  0x17   :  { %180 = vmatpush.bf16.msra.mxu1 %v318_v4  ;;  %v329_v4 = vld [vmem:[#allocation8] ss:$0 sm:$0xff] }
  0x19   :  { %295 = vmatmul.msk.bf16.vlgmr.msra.gmra.mxu0 %vm86_vm0, %v313_v2  ;;  %v136_v16 = vld [vmem:[#allocation2] sm:$0xff]  ;;  %v331_v35 = vpop.eup %330 }
  0x1a   :  { %v137_v19 = vld [vmem:[#allocation2 + $0x8] sm:$0xff]  ;;  %v217_v36 = vmul.f32 32.0, %v331_v35  ;;  %vm221_vm2 = vweird.f32 %v331_v35 }
  0x1b   :  { %181 = vmatpush.bf16.msra.mxu1 %v317_v5 }
  0x1c   :  { %v218_v37 = vsub.f32 1.0, %v217_v36 }
  0x1e   :  { %v219_v38 = vmul.f32 %v331_v35, %v218_v37 }
  0x1f   :  { %182 = vmatpush.bf16.msra.mxu1 %v316_v6 }
  0x20   :  { %v220_v39 = vadd.f32 %v331_v35, %v219_v38 }
  0x22   :  { %v222_v40 = vsel %vm221_vm2, %v331_v35, %v220_v39 }
  0x96   :  { %v129_v8 = vpop.f32.mrf.mxu0 }
  0x97   :  { %v130_v10 = vadd.f32 %v326_v9, %v129_v8 }
  0x99   :  { %v134_v13 = vmax.f32 %v130_v10, 0.0 }
  0x9e   :  { %v131_v11 = vpop.f32.mrf.mxu0 }
  0x9f   :  { %v132_v12 = vadd.f32 %v326_v9, %v131_v11 }
  0xa1   :  { %v135_v14 = vmax.f32 %v132_v12, 0.0 }
  0xa3   :  { %v138_v15 = vpack.c.bf16 %v135_v14, %v134_v13 }
  0xa5   :  { %312 = vmatmul.msk.bf16.vlgmr.msra.gmra.mxu1 %vm171_vm1, %v138_v15 }
 0x122   :  { %v184_v17 = vpop.f32.mrf.mxu1 }
 0x123   :  { %v189_v18 = vadd.f32 %v184_v17, %v136_v16 }
 0x125   :  { %191 = vst.msk [vmem:[#allocation2] sm:$0xff] %vm86_vm0, %v189_v18 }
 0x12a   :  { %v186_v22 = vpop.f32.mrf.mxu1 }
 0x12b   :  { %v190_v23 = vadd.f32 %v186_v22, %v137_v19 }
 0x12c   :  { %v196_v25 = vld [vmem:[#allocation2] sm:$0xff] }
 0x12d   :  { %192 = vst.msk [vmem:[#allocation2 + $0x8] sm:$0xff] %vm86_vm0, %v190_v23  ;;  %v202_v26 = vadd.f32 %v327_v21, %v196_v25 }
 0x12f   :  { %v206_v27 = vadd.f32 %v204_v24, %v202_v26 }
 0x131   :  { %v210_v28 = vsel %vm86_vm0, %v206_v27, 0.0 }
 0x132   :  { %211 = vadd.xlane.f32.xlu0 %v210_v28 }
 0x134   :  { %v197_v30 = vld [vmem:[#allocation2 + $0x8] sm:$0xff] }
 0x135   :  { %v203_v31 = vadd.f32 %v327_v21, %v197_v30 }
 0x137   :  { %v207_v32 = vadd.f32 %v205_v29, %v203_v31 }
 0x139   :  { %v213_v33 = vsel %vm86_vm0, %v207_v32, 0.0 }
 0x13a   :  { %214 = vadd.xlane.f32.xlu0 %v213_v33 }
 0x1a5   :  { %v212_v41 = vpop.xlane.xlu0 %211 }
 0x1a6   :  { %v223_v42 = vmul.f32 %v222_v40, %v212_v41 }
 0x1a8   :  { %v225_v43 = vsub.f32 %v206_v27, %v223_v42 }
 0x1aa   :  { %v227_v44 = vmul.f32 %v225_v43, %v225_v43 }
 0x1ac   :  { %v229_v45 = vsel %vm86_vm0, %v227_v44, 0.0 }
 0x1ad   :  { %230 = vadd.xlane.f32.xlu1 %v229_v45  ;;  %v215_v46 = vpop.xlane.xlu0 %214 }
 0x1ae   :  { %v224_v47 = vmul.f32 %v222_v40, %v215_v46 }
 0x1b0   :  { %v226_v48 = vsub.f32 %v207_v32, %v224_v47 }
 0x1b2   :  { %v228_v49 = vmul.f32 %v226_v48, %v226_v48 }
 0x1b4   :  { %v232_v50 = vsel %vm86_vm0, %v228_v49, 0.0 }
 0x1b5   :  { %233 = vadd.xlane.f32.xlu1 %v232_v50 }
 0x220   :  { %v231_v51 = vpop.xlane.xlu1 %230 }
 0x221   :  { %v235_v52 = vmul.f32 %v231_v51, %v222_v40 }
 0x223   :  { %v237_v53 = vadd.f32 1e-05, %v235_v52 }
 0x225   :  { %332 = vrsqrt.f32 %v237_v53  ;;  %vm245_vm4 = vweird.f32 %v237_v53 }
 0x228   :  { %v234_v54 = vpop.xlane.xlu1 %233 }
 0x229   :  { %v236_v55 = vmul.f32 %v234_v54, %v222_v40 }
 0x22b   :  { %v333_v56 = vpop.eup %332  ;;  %v238_v57 = vadd.f32 1e-05, %v236_v55 }
 0x22c   :  { %v240_v58 = vmul.f32 %v333_v56, %v237_v53  ;;  %vm246_vm3 = vweird.f32 %v333_v56 }
 0x22d   :  { %334 = vrsqrt.f32 %v238_v57  ;;  %vm247_vm5 = vmor %vm245_vm4, %vm246_vm3  ;;  %vm255_vm8 = vweird.f32 %v238_v57 }
 0x22e   :  { %v241_v59 = vmul.f32 %v333_v56, %v240_v58 }
 0x230   :  { %v242_v60 = vmul.f32 0.5, %v241_v59 }
 0x232   :  { %v243_v61 = vsub.f32 1.5, %v242_v60 }
 0x233   :  { %v335_v62 = vpop.eup %334 }
 0x234   :  { %v244_v63 = vmul.f32 %v333_v56, %v243_v61  ;;  %v250_v0 = vmul.f32 %v335_v62, %v238_v57  ;;  %vm256_vm6 = vweird.f32 %v335_v62 }
 0x235   :  { %vm257_vm9 = vmor %vm255_vm8, %vm256_vm6 }
 0x236   :  { %v248_v2 = vsel %vm247_vm5, %v333_v56, %v244_v63  ;;  %v251_v3 = vmul.f32 %v335_v62, %v250_v0 }
 0x237   :  { %v259_v5 = vmul.f32 %v248_v2, %v225_v43 }
 0x238   :  { %v252_v6 = vmul.f32 0.5, %v251_v3 }
 0x239   :  { %v264_v7 = vmul.f32 %v328_v1, %v259_v5 }
 0x23a   :  { %v253_v8 = vsub.f32 1.5, %v252_v6 }
 0x23b   :  { %v269_v9 = vadd.f32 %v329_v4, %v264_v7 }
 0x23c   :  { %v254_v10 = vmul.f32 %v335_v62, %v253_v8 }
 0x23d   :  { %v271_v11 = vpack.c.bf16 %v269_v9, %v269_v9 }
 0x23e   :  { %v258_v12 = vsel %vm257_vm9, %v335_v62, %v254_v10 }
 0x23f   :  { %274 = vst.msk [vmem:[%s542_s7] sm:$0xf] %vm273_vm7, %v271_v11  ;;  %v260_v13 = vmul.f32 %v258_v12, %v226_v48 }
 0x241   :  { %v265_v14 = vmul.f32 %v328_v1, %v260_v13 }
 0x243   :  { %v270_v15 = vadd.f32 %v329_v4, %v265_v14 }
 0x245   :  { %v272_v16 = vpack.c.bf16 %v270_v15, %v270_v15 }
 0x247   :  { %275 = vst.msk [vmem:[%s542_s7 + $0x4] sm:$0xf] %vm273_vm7, %v272_v16 }
 0x248   :  { %280 = vsyncpa [#allocation4], 1 }
 0x249   :  { %281 = vsyncpa [#allocation6], 1 }
 0x24a   :  { %282 = vsyncpa [#allocation9], 1 }

// kernel: _lambda_.8
= control target key start
LH: loop header
LB: loop body
LE: loop exit
PB: predicated region body
PF: predicated region fallthrough
CT: control target
= control target key end

     0   :  { %vm31_vm0 = vcmask 261120   ;;  %v274_v7 = vmov 0.0   ;;  %vm116_vm1 = vcmask 523264   ;;  %v275_v34 = vmov 32.0   ;;  %s367_s1 = inlined_call_operand.vmem [shape: bf16[32,64], index: 1, kind: input, shape index: {}]   ;;  %s368_s2 = inlined_call_operand.vmem [shape: f32[1,64], index: 2, kind: input, shape index: {}]   ;;  %s369_s0 = inlined_call_operand.vmem [shape: bf16[16,32], index: 0, kind: input, shape index: {}]   ;;  %s370_s3 = inlined_call_operand.vmem [shape: bf16[64,32], index: 3, kind: input, shape index: {}]   ;;  %s371_s4 = inlined_call_operand.vmem [shape: f32[1,32], index: 4, kind: input, shape index: {}]   ;;  %s372_s5 = inlined_call_operand.vmem [shape: f32[1,32], index: 5, kind: input, shape index: {}]   ;;  %s373_s6 = inlined_call_operand.vmem [shape: f32[1,32], index: 6, kind: input, shape index: {}]   ;;  %s374_s7 = inlined_call_operand.vmem [shape: bf16[16,32], index: 7, kind: output, shape index: {}]  }
   0x1   :  { %v257_v0 = vld [vmem:[%s367_s1 + $0x8] sm:$0xff]  ;;  %v256_v1 = vld [vmem:[%s367_s1] sm:$0xff]  ;;  %v261_v3 = vld [vmem:[%s370_s3 + $0x18] sm:$0xff]  ;;  %32 = vst.msk [vmem:[#allocation2] sm:$0xff] %vm31_vm0, %v274_v7  ;;  %268 = vrcp.f32 %v275_v34  ;;  %vm218_vm7 = vcmask 257024  }
   0x2   :  { %71 = vmatpush.bf16.msra.mxu0 %v257_v0  ;;  %v255_v2 = vld [vmem:[%s369_s0] sm:$0xff]  ;;  %124 = vmatpush.bf16.msra.mxu1 %v261_v3  ;;  %v260_v4 = vld [vmem:[%s370_s3 + $0x10] sm:$0xff]  ;;  %v259_v5 = vld [vmem:[%s370_s3 + $0x8] sm:$0xff]  ;;  %33 = vst.msk [vmem:[#allocation2 + $0x8] sm:$0xff] %vm31_vm0, %v274_v7 }
   0x3   :  { %v258_v6 = vld [vmem:[%s370_s3] sm:$0xff] }
   0x4   :  { %v264_v9 = vld [vmem:[%s368_s2] ss:$0 sm:$0xff] }
   0x5   :  { %v34_v20 = vld [vmem:[%s369_s0] sm:$0xff]  }
   0x6   :  { %72 = vmatpush.bf16.msra.mxu0 %v256_v1  ;;  %125 = vmatpush.bf16.msra.mxu1 %v260_v4  ;;  %v265_v21 = vld [vmem:[%s371_s4] ss:$0 sm:$0xff]  ;;  %v149_v24 = vunpack.c.l.bf16 %v34_v20  ;;  %v150_v29 = vunpack.c.h.bf16 %v34_v20 }
   0x7   :  { %v269_v35 = vpop.eup %268  ;;  %v266_v1 = vld [vmem:[%s372_s5] ss:$0 sm:$0xff] }
   0x8   :  { %v81_v16 = vld [vmem:[#allocation2] sm:$0xff]  ;;  %v162_v36 = vmul.f32 32.0, %v269_v35  ;;  %vm166_vm2 = vweird.f32 %v269_v35 }
   0x9   :  { %237 = vmatmul.msk.bf16.vlgmr.msra.gmra.mxu0 %vm31_vm0, %v255_v2  ;;  %v82_v19 = vld [vmem:[#allocation2 + $0x8] sm:$0xff]  ;;  %v267_v4 = vld [vmem:[%s373_s6] ss:$0 sm:$0xff] }
   0xa   :  { %126 = vmatpush.bf16.msra.mxu1 %v259_v5  ;;  %v163_v37 = vsub.f32 1.0, %v162_v36 }
   0xc   :  { %v164_v38 = vmul.f32 %v269_v35, %v163_v37 }
   0xe   :  { %127 = vmatpush.bf16.msra.mxu1 %v258_v6  ;;  %v165_v39 = vadd.f32 %v269_v35, %v164_v38 }
  0x10   :  { %v167_v40 = vsel %vm166_vm2, %v269_v35, %v165_v39 }
  0x86   :  { %v74_v8 = vpop.f32.mrf.mxu0 }
  0x87   :  { %v75_v10 = vadd.f32 %v264_v9, %v74_v8 }
  0x89   :  { %v79_v13 = vmax.f32 %v75_v10, 0.0 }
  0x8e   :  { %v76_v11 = vpop.f32.mrf.mxu0 }
  0x8f   :  { %v77_v12 = vadd.f32 %v264_v9, %v76_v11 }
  0x91   :  { %v80_v14 = vmax.f32 %v77_v12, 0.0 }
  0x93   :  { %v83_v15 = vpack.c.bf16 %v80_v14, %v79_v13 }
  0x95   :  { %254 = vmatmul.msk.bf16.vlgmr.msra.gmra.mxu1 %vm116_vm1, %v83_v15 }
 0x112   :  { %v129_v17 = vpop.f32.mrf.mxu1 }
 0x113   :  { %v134_v18 = vadd.f32 %v129_v17, %v81_v16 }
 0x115   :  { %136 = vst.msk [vmem:[#allocation2] sm:$0xff] %vm31_vm0, %v134_v18 }
 0x11a   :  { %v131_v22 = vpop.f32.mrf.mxu1 }
 0x11b   :  { %v135_v23 = vadd.f32 %v131_v22, %v82_v19 }
 0x11c   :  { %v141_v25 = vld [vmem:[#allocation2] sm:$0xff] }
 0x11d   :  { %137 = vst.msk [vmem:[#allocation2 + $0x8] sm:$0xff] %vm31_vm0, %v135_v23  ;;  %v147_v26 = vadd.f32 %v265_v21, %v141_v25 }
 0x11f   :  { %v151_v27 = vadd.f32 %v149_v24, %v147_v26 }
 0x121   :  { %v155_v28 = vsel %vm31_vm0, %v151_v27, 0.0 }
 0x122   :  { %156 = vadd.xlane.f32.xlu0 %v155_v28 }
 0x124   :  { %v142_v30 = vld [vmem:[#allocation2 + $0x8] sm:$0xff] }
 0x125   :  { %v148_v31 = vadd.f32 %v265_v21, %v142_v30 }
 0x127   :  { %v152_v32 = vadd.f32 %v150_v29, %v148_v31 }
 0x129   :  { %v158_v33 = vsel %vm31_vm0, %v152_v32, 0.0 }
 0x12a   :  { %159 = vadd.xlane.f32.xlu0 %v158_v33 }
 0x195   :  { %v157_v41 = vpop.xlane.xlu0 %156 }
 0x196   :  { %v168_v42 = vmul.f32 %v167_v40, %v157_v41 }
 0x198   :  { %v170_v43 = vsub.f32 %v151_v27, %v168_v42 }
 0x19a   :  { %v172_v44 = vmul.f32 %v170_v43, %v170_v43 }
 0x19c   :  { %v174_v45 = vsel %vm31_vm0, %v172_v44, 0.0 }
 0x19d   :  { %175 = vadd.xlane.f32.xlu1 %v174_v45  ;;  %v160_v46 = vpop.xlane.xlu0 %159 }
 0x19e   :  { %v169_v47 = vmul.f32 %v167_v40, %v160_v46 }
 0x1a0   :  { %v171_v48 = vsub.f32 %v152_v32, %v169_v47 }
 0x1a2   :  { %v173_v49 = vmul.f32 %v171_v48, %v171_v48 }
 0x1a4   :  { %v177_v50 = vsel %vm31_vm0, %v173_v49, 0.0 }
 0x1a5   :  { %178 = vadd.xlane.f32.xlu1 %v177_v50 }
 0x210   :  { %v176_v51 = vpop.xlane.xlu1 %175 }
 0x211   :  { %v180_v52 = vmul.f32 %v176_v51, %v167_v40 }
 0x213   :  { %v182_v53 = vadd.f32 1e-05, %v180_v52 }
 0x215   :  { %270 = vrsqrt.f32 %v182_v53  ;;  %vm190_vm4 = vweird.f32 %v182_v53 }
 0x218   :  { %v179_v54 = vpop.xlane.xlu1 %178 }
 0x219   :  { %v181_v55 = vmul.f32 %v179_v54, %v167_v40 }
 0x21b   :  { %v271_v56 = vpop.eup %270  ;;  %v183_v57 = vadd.f32 1e-05, %v181_v55 }
 0x21c   :  { %v185_v58 = vmul.f32 %v271_v56, %v182_v53  ;;  %vm191_vm3 = vweird.f32 %v271_v56 }
 0x21d   :  { %272 = vrsqrt.f32 %v183_v57  ;;  %vm192_vm5 = vmor %vm190_vm4, %vm191_vm3  ;;  %vm200_vm8 = vweird.f32 %v183_v57 }
 0x21e   :  { %v186_v59 = vmul.f32 %v271_v56, %v185_v58 }
 0x220   :  { %v187_v60 = vmul.f32 0.5, %v186_v59 }
 0x222   :  { %v188_v61 = vsub.f32 1.5, %v187_v60 }
 0x223   :  { %v273_v62 = vpop.eup %272 }
 0x224   :  { %v189_v63 = vmul.f32 %v271_v56, %v188_v61  ;;  %v195_v0 = vmul.f32 %v273_v62, %v183_v57  ;;  %vm201_vm6 = vweird.f32 %v273_v62 }
 0x225   :  { %vm202_vm9 = vmor %vm200_vm8, %vm201_vm6 }
 0x226   :  { %v193_v2 = vsel %vm192_vm5, %v271_v56, %v189_v63  ;;  %v196_v3 = vmul.f32 %v273_v62, %v195_v0 }
 0x227   :  { %v204_v5 = vmul.f32 %v193_v2, %v170_v43 }
 0x228   :  { %v197_v6 = vmul.f32 0.5, %v196_v3 }
 0x229   :  { %v209_v7 = vmul.f32 %v266_v1, %v204_v5 }
 0x22a   :  { %v198_v8 = vsub.f32 1.5, %v197_v6 }
 0x22b   :  { %v214_v9 = vadd.f32 %v267_v4, %v209_v7 }
 0x22c   :  { %v199_v10 = vmul.f32 %v273_v62, %v198_v8 }
 0x22d   :  { %v216_v11 = vpack.c.bf16 %v214_v9, %v214_v9 }
 0x22e   :  { %v203_v12 = vsel %vm202_vm9, %v273_v62, %v199_v10 }
 0x22f   :  { %219 = vst.msk [vmem:[%s374_s7] sm:$0xf] %vm218_vm7, %v216_v11  ;;  %v205_v13 = vmul.f32 %v203_v12, %v171_v48 }
 0x231   :  { %v210_v14 = vmul.f32 %v266_v1, %v205_v13 }
 0x233   :  { %v215_v15 = vadd.f32 %v267_v4, %v210_v14 }
 0x235   :  { %v217_v16 = vpack.c.bf16 %v215_v15, %v215_v15 }
 0x237   :  { %220 = vst.msk [vmem:[%s374_s7 + $0x4] sm:$0xf] %vm218_vm7, %v217_v16 }

// kernel: _lambda_.5
= control target key start
LH: loop header
LB: loop body
LE: loop exit
PB: predicated region body
PF: predicated region fallthrough
CT: control target
= control target key end

     0   :  { %s1883_s0 = inlined_call_operand.vmem [shape: bf16[2,8,32], index: 0, kind: input, shape index: {}, may-alias: {0,1}]   ;;  %s1884_s1 = inlined_call_operand.vmem [shape: bf16[2,8,32], index: 1, kind: input, shape index: {}, may-alias: {0,1}]   ;;  %s1885_s2 = inlined_call_operand.vmem [shape: bf16[32,32], index: 2, kind: input, shape index: {}]   ;;  %s1886_s3 = inlined_call_operand.vmem [shape: f32[1,32], index: 3, kind: input, shape index: {}]   ;;  %s1887_s4 = inlined_call_operand.vmem [shape: bf16[32,32], index: 4, kind: input, shape index: {}]   ;;  %s1888_s5 = inlined_call_operand.hbm [shape: f32[1,32], index: 5, kind: input, shape index: {}]   ;;  %s1889_s6 = inlined_call_operand.hbm [shape: bf16[32,32], index: 6, kind: input, shape index: {}]   ;;  %s1890_s7 = inlined_call_operand.hbm [shape: f32[1,32], index: 7, kind: input, shape index: {}]   ;;  %s1891_s8 = inlined_call_operand.hbm [shape: bf16[32,32], index: 8, kind: input, shape index: {}]   ;;  %s1892_s9 = inlined_call_operand.hbm [shape: f32[1,32], index: 9, kind: input, shape index: {}]   ;;  %s1893_s10 = inlined_call_operand.hbm [shape: f32[1,32], index: 10, kind: input, shape index: {}]   ;;  %s1894_s11 = inlined_call_operand.hbm [shape: f32[1,32], index: 11, kind: input, shape index: {}]   ;;  %s1895_s12 = inlined_call_operand.vmem [shape: bf16[2,8,32], index: 12, kind: output, shape index: {}]  }
   0x1   :  { %1896 = sst [smem:[#allocation20_spill]] %s1889_s6 }
   0x2   :  { %1897 = sst [smem:[#allocation21_spill]] %s1891_s8 }
   0x3   :  { %1898 = sst [smem:[#allocation22_spill]] %s1893_s10 }
   0x4   :  { %17 = vsyncpa [#allocation6], 0 }
   0x5   :  { %18 = vsyncpa [#allocation8], 0 }
   0x6   :  { %19 = vsyncpa [#allocation11], 0 }
   0x7   :  { %20 = vsyncpa [#allocation14], 0  ;;  %s1706_s21 = smov 0   ;;  %s1708_s22 = smov 0  }
   0x8   :  { %s1710_s23 = smov 0  }
   0x9 LB: > { %s1899_s6 = sld [smem:[#allocation20_spill]]  ;;  %s1169_s27 = sadd.s32 4294967295, %s1623_s23   ;;  %s1623_s23 = sphi %s1710_s23, %s26_s23   ;;  %s1619_s22 = sphi %s1708_s22, %s1906_s22   ;;  %s1615_s21 = sphi %s1706_s21, %s1905_s21  }
   0xa   : > { %p1171_p0 = scmp.ge.s32.totalorder %s1623_s23, 1  ;;  %p335_p1 = scmp.lt.s32.totalorder %s1623_s23, 3 }
   0xb   : > { %p1727_p2 = scmp.eq.s32.totalorder %s1169_s27, 0  ;;  %s1625_s30 = smov [#allocation7]  }
   0xc   : > { %p1731_p3 = pnand %p1171_p0, %p335_p1  ;;  %s369_s13 = sshll.u32 %s1625_s30, 4  ;;  %s370_s13 = int_to_ptr.vmem [resolvable:$true] %s369_s13 }
   0xd   : > { %s1902_s8 = sld [smem:[#allocation21_spill]]  ;;  %s1626_s18 = smov [#allocation10]  }
   0xe   : > { %p1273_p4 = pneg %p1731_p3  ;;  %s395_s19 = sshll.u32 %s1626_s18, 4  ;;  %s396_s19 = int_to_ptr.vmem [resolvable:$true] %s395_s19 }
   0xf   : > { %s367_s26 = sshll.u32 %s1899_s6, 4  ;;  %s1904_s10 = sld [smem:[#allocation22_spill]]  ;;  %s368_s26 = int_to_ptr.hbm [resolvable:$true] %s367_s26 }
  0x10   : > { %p1742_p5 = pnand %p1727_p2, %p1273_p4  ;;  %s1627_s27 = smov 64  }
  0x11   : > { %s1628_s30 = smov 4   ;;  %s1629_s14 = smov [#allocation13]  }
  0x12   : > { %1279 = dma.hbm_to_vmem [thread:$0]  (!%p1742_p5), %s368_s26, 256, %s370_s13, [#allocation8], %s1627_s27, %s1627_s27, %s1628_s30  }
  0x13   : > { %s393_s16 = sshll.u32 %s1902_s8, 4  ;;  %s422_s15 = sshll.u32 %s1629_s14, 4  ;;  %s394_s16 = int_to_ptr.hbm [resolvable:$true] %s393_s16  ;;  %s423_s15 = int_to_ptr.vmem [resolvable:$true] %s422_s15 }
  0x14   : > { %1285 = dma.hbm_to_vmem [thread:$0]  (!%p1742_p5), %s394_s16, 256, %s396_s19, [#allocation11], %s1627_s27, %s1627_s27, %s1628_s30  }
  0x15   : > { %s420_s25 = sshll.u32 %s1904_s10, 4  ;;  %s38_s6 = sadd.s32 1, %s1619_s22  ;;  %s421_s25 = int_to_ptr.hbm [resolvable:$true] %s420_s25 }
  0x16   : > { %1291 = dma.hbm_to_vmem [thread:$0]  (!%p1742_p5), %s421_s25, 16, %s423_s15, [#allocation14]  }
  0x17   : > { %s356_s20 = sshll.u32 %s1888_s5, 4  ;;  %p40_p6 = scmp.ge.s32.totalorder %s38_s6, 2  ;;  %s357_s20 = int_to_ptr.hbm [resolvable:$true] %s356_s20 }
  0x18   : > { %s382_s26 = sshll.u32 %s1890_s7, 4  ;;  %s1630_s13 = smov [#allocation5]   ;;  %s383_s26 = int_to_ptr.hbm [resolvable:$true] %s382_s26 }
  0x19   : > { %s1908_s6 = smov (%p40_p6, %s38_s6), 0  ;;  %s358_s16 = sshll.u32 %s1630_s13, 4  ;;  %s359_s16 = int_to_ptr.vmem [resolvable:$true] %s358_s16 }
  0x1a   : > { %1276 = dma.hbm_to_vmem [thread:$0]  (!%p1742_p5), %s357_s20, 16, %s359_s16, [#allocation6]  }
  0x1b   : > { %s1631_s19 = smov [#allocation9]   ;;  %s408_s30 = sshll.u32 %s1892_s9, 4  ;;  %s409_s30 = int_to_ptr.hbm [resolvable:$true] %s408_s30 }
  0x1c   : > { %s384_s8 = sshll.u32 %s1631_s19, 4  ;;  %s432_s15 = sshll.u32 %s1894_s11, 4  ;;  %s385_s8 = int_to_ptr.vmem [resolvable:$true] %s384_s8  ;;  %s433_s15 = int_to_ptr.hbm [resolvable:$true] %s432_s15 }
  0x1d   : > { %1282 = dma.hbm_to_vmem [thread:$0]  (!%p1742_p5), %s383_s26, 16, %s385_s8, [#allocation8]  }
  0x1e   : > { %s1632_s18 = smov [#allocation12]   ;;  %s1633_s20 = smov [#allocation15]  }
  0x1f   : > { %s410_s24 = sshll.u32 %s1632_s18, 4  ;;  %s434_s13 = sshll.u32 %s1633_s20, 4  ;;  %s411_s24 = int_to_ptr.vmem [resolvable:$true] %s410_s24  ;;  %s435_s13 = int_to_ptr.vmem [resolvable:$true] %s434_s13 }
  0x20   : > { %1288 = dma.hbm_to_vmem [thread:$0]  (!%p1742_p5), %s409_s30, 16, %s411_s24, [#allocation11]  }
  0x21   : > { %1294 = dma.hbm_to_vmem [thread:$0]  (!%p1742_p5), %s433_s15, 16, %s435_s13, [#allocation14]  }
  0x22   : > { %464 = sbr.rel (%p1731_p3) target bundleno = 1401 (0x579), region = 68 }
  0x27   : > { %1598 = dma.done.wait (%p1727_p2), [#allocation6], 16  }
  0x28   : > { %1600 = vsyncadd (%p1727_p2), [#allocation6], 4294967280 }
  0x29   : > { %1602 = dma.done.wait (%p1727_p2), [#allocation8], 272  }
  0x2a   : > { %1604 = vsyncadd (%p1727_p2), [#allocation8], 4294967024 }
  0x2b   : > { %1606 = dma.done.wait (%p1727_p2), [#allocation11], 272  }
  0x2c   : > { %1608 = vsyncadd (%p1727_p2), [#allocation11], 4294967024 }
  0x2d   : > { %1610 = dma.done.wait (%p1727_p2), [#allocation14], 32  }
  0x2e   : > { %1612 = vsyncadd (%p1727_p2), [#allocation14], 4294967264  ;;  %p545_p7 = scmp.lt.s32.totalorder %s1615_s21, 1  ;;  %v1238_v0 = vld [vmem:[%s1887_s4 + $0x8] sm:$0xff]  ;;  %v1237_v2 = vld [vmem:[%s1887_s4] sm:$0xff]  ;;  %vm589_vm0 = vcmask 261120  }
  0x2f   : > { %v1242_v1 = vld [vmem:[%s1885_s2 + $0x8] sm:$0xff]  ;;  %599 = vmatpush.bf16.msra.mxu0 %v1238_v0  ;;  %v1241_v3 = vld [vmem:[%s1885_s2] sm:$0xff]  ;;  %v1349_v6 = vld [vmem:[#allocation5] ss:$0 sm:$0xff]  ;;  %vm607_vm1 = vcmask 257024   ;;  %vm685_vm2 = vcmask 64512  }
  0x30   : > { %s1910_s21 = smov (!%p545_p7, %s1615_s21), 1  ;;  %675 = vmatpush.bf16.msra.mxu2 %v1242_v1  ;;  %v1350_v10 = vld [vmem:[%s1886_s3] ss:$0 sm:$0xff]  ;;  %s1634_s13 = smov 112   ;;  %v1239_v21 = vld [vmem:[#allocation7] sm:$0xff]  ;;  %vm720_vm3 = vcmask 1043456  }
  0x31   : > { %s1804_s19 = sshll.u32 %s1910_s21, 2  ;;  %s1635_s29 = smov 120   ;;  %v1240_v20 = vld [vmem:[#allocation7 + $0x8] sm:$0xff]  ;;  %v1351_v34 = vld [vmem:[#allocation9] ss:$0 sm:$0xff]  ;;  %vm805_vm4 = vcmask 130112  }
  0x32   : > { %s555_s14 = scalar_lea.vmem %s1884_s1, %s1804_s19  ;;  %s551_s21 = scalar_lea.vmem %s1883_s0, %s1804_s19  ;;  %635 = vmatpush.bf16.msra.mxu1 %v1240_v20  ;;  %vm867_vm5 = vcmask 195712   ;;  %vm929_vm6 = vcmask 261312  }
  0x33   : > { %600 = vmatpush.bf16.msra.mxu0 %v1237_v2  ;;  %v568_v4 = vld [vmem:[%s555_s14] sm:$0xf]  ;;  %s1636_s17 = smov 104   ;;  %s1637_s26 = smov 8  }
  0x34   : > { %676 = vmatpush.bf16.msra.mxu2 %v1241_v3  ;;  %v1820_v5 = vld [vmem:[%s551_s21] sm:$0xf]  ;;  %s1638_s16 = smov 24   ;;  %s1639_s8 = smov 16  }
  0x35   : > { %s562_s27 = scalar_lea.vmem %s1895_s12, %s1804_s19 }
  0x36   : > { %1199 = vmatmul.msk.bf16.vlgmr.msra.gmra.mxu0 %vm589_vm0, %v568_v4  ;;  %636 = vmatpush.bf16.msra.mxu1 %v1239_v21 }
  0x37   : > { %1217 = vmatmul.msk.bf16.vlgmr.msra.gmra.mxu2 %vm589_vm0, %v1820_v5 }
  0x39   : > { %1208 = vmatmul.msk.bf16.vlgmr.msra.gmra.mxu1 %vm589_vm0, %v568_v4 }
  0xb3   : > { %v602_v7 = vpop.f32.mrf.mxu0 }
  0xb4   : > { %v603_v8 = vadd.f32 %v1349_v6, %v602_v7 }
  0xb6   : > { %v606_v9 = vpack.c.bf16 %v603_v8, %v603_v8  ;;  %v638_v35 = vpop.f32.mrf.mxu1 }
  0xb7   : > { %v639_v36 = vadd.f32 %v1351_v34, %v638_v35 }
  0xb8   : > { %608 = vst.msk [vmem:[#allocation2] sm:$0xf] %vm607_vm1, %v606_v9 }
  0xb9   : > { %v642_v37 = vpack.c.bf16 %v639_v36, %v639_v36 }
  0xba   : > { %v678_v11 = vpop.f32.mrf.mxu2 }
  0xbb   : > { %v679_v12 = vadd.f32 %v1350_v10, %v678_v11  ;;  %v604_v13 = vpop.f32.mrf.mxu0  ;;  %643 = vst.msk [vmem:[#allocation3] sm:$0xf] %vm607_vm1, %v642_v37 }
  0xbd   : > { %v684_v14 = vpack.c.bf16 %v679_v12, %v679_v12 }
  0xbe   : > { %v640_v38 = vpop.f32.mrf.mxu1 }
  0xbf   : > { %807 = vrot.lane.b32.xlu2 %v684_v14, %s1634_s13  ;;  %v682_v15 = vld [vmem:[#allocation2] sm:$0xf] }
  0xc0   : > { %v690_v16 = vsel %vm685_vm2, %v682_v15, 0  ;;  %v742_v17 = vunpack.c.l.b16 %v682_v15 }
  0xc1   : > { %699 = vmatpush.bf16.xpose.msra.mxu3 %v690_v16 }
  0xc2   : > { %v680_v18 = vpop.f32.mrf.mxu2  ;;  %v743_v19 = vpack.c.b16 %v742_v17, %v742_v17  ;;  %v683_v39 = vld [vmem:[#allocation3] sm:$0xf] }
  0xc3   : > { %v722_v40 = vsel %vm720_vm3, %v683_v39, 0  ;;  %v778_v55 = vunpack.c.l.b16 %v683_v39 }
  0xc4   : > { %809 = vrot.lane.b32.xlu1 %v743_v19, %s1634_s13  ;;  %744 = vrot.lane.b32.xlu0 %v743_v19, %s1635_s29 }
  0xc5   : > { %731 = vmatpush.bf16.msrb.mxu0 %v722_v40  ;;  %v779_v56 = vpack.c.b16 %v778_v55, %v778_v55  ;;  %v1244_v40 = vld [vmem:[#allocation10 + $0x8] sm:$0xff] }
  0xc7   : > { %869 = vrot.lane.b32.xlu2 %v684_v14, %s1636_s17 }
  0xc8   : > { %1218 = vmatmul.msk.bf16.vlgmr.msra.gmra.mxu3 %vm685_vm2, %v684_v14 }
  0xcc   : > { %871 = vrot.lane.b32.xlu1 %v743_v19, %s1636_s17  ;;  %739 = vrot.lane.b32.xlu0 %v684_v14, %s1635_s29 }
 0x119   : > { %v808_v26 = vpop.permute.xlu2 %807 }
 0x121   : > { %v870_v32 = vpop.permute.xlu2 %869 }
 0x136   : > { %v810_v22 = vpop.permute.xlu1 %809  ;;  %v745_v23 = vpop.permute.xlu0 %744 }
 0x137   : > { %v750_v24 = vsel %vm685_vm2, %v745_v23, 0  ;;  %v815_v25 = vsel %vm685_vm2, %v810_v22, 0 }
 0x138   : > { %759 = vmatpush.bf16.xpose.msrb.mxu1 %v750_v24  ;;  %824 = vmatpush.bf16.xpose.msrb.mxu3 %v815_v25 }
 0x13e   : > { %v872_v27 = vpop.permute.xlu1 %871  ;;  %v740_v28 = vpop.permute.xlu0 %739 }
 0x13f   : > { %v877_v29 = vsel %vm685_vm2, %v872_v27, 0  ;;  %1220 = vmatmul.msk.bf16.vlgmr.msrb.gmra.mxu1 %vm685_vm2, %v740_v28  ;;  %1222 = vmatmul.msk.bf16.vlgmr.msrb.gmra.mxu3 %vm685_vm2, %v808_v26 }
 0x140   : > { %886 = vmatpush.bf16.xpose.msra.mxu1 %v877_v29  ;;  %962 = vmatpush.bf16.msra.mxu3 %v1244_v40 }
 0x14b   : > { %v701_v30 = vpop.f32.mrf.mxu3 }
 0x14c   : > { %v705_v31 = vsel %vm685_vm2, %v701_v30, -inf }
 0x14d   : > { %706 = vmax.xlane.f32.xlu1 %v705_v31 }
 0x14f   : > { %1224 = vmatmul.msk.bf16.vlgmr.msra.gmra.mxu1 %vm685_vm2, %v870_v32 }
 0x153   : > { %v703_v33 = vpop.f32.mrf.mxu3 }
 0x1bc   : > { %v761_v41 = vpop.f32.mrf.mxu1 }
 0x1bd   : > { %v765_v42 = vsel %vm685_vm2, %v761_v41, -inf }
 0x1be   : > { %766 = vmax.xlane.f32.xlu0 %v765_v42 }
 0x1c0   : > { %v707_v43 = vpop.xlane.xlu1 %706 }
 0x1c1   : > { %v708_v44 = vsub.f32 %v701_v30, %v707_v43 }
 0x1c2   : > { %v826_v45 = vpop.f32.mrf.mxu3 }
 0x1c3   : > { %v709_v46 = vmul.f32 1.442695, %v708_v44  ;;  %v830_v54 = vsel %vm685_vm2, %v826_v45, -inf }
 0x1c4   : > { %v763_v47 = vpop.f32.mrf.mxu1 }
 0x1c5   : > { %1355 = vpow2.f32 %v709_v46  ;;  %v1352_v46 = vld [vmem:[#allocation12] ss:$0 sm:$0xff]  ;;  %v969_v47 = vunpack.c.l.bf16 %v1820_v5 }
 0x1ca   : > { %v828_v48 = vpop.f32.mrf.mxu3 }
 0x1cb   : > { %v1356_v49 = vpop.eup %1355 }
 0x1cc   : > { %v888_v50 = vpop.f32.mrf.mxu1  ;;  %v711_v51 = vsel %vm685_vm2, %v1356_v49, 0.0 }
 0x1cd   : > { %712 = vadd.xlane.f32.xlu1 %v711_v51  ;;  %v892_v52 = vsel %vm685_vm2, %v888_v50, -inf }
 0x1ce   : > { %893 = vmax.xlane.f32.xlu2 %v892_v52 }
 0x1d4   : > { %v890_v53 = vpop.f32.mrf.mxu1 }
 0x1d5   : > { %v1640_v53 = vmov 32.0  }
 0x1d6   : > { %831 = vmax.xlane.f32.xlu2 %v830_v54 }
 0x1ee   : > { %780 = vrot.lane.b32.xlu2 %v779_v56, %s1635_s29 }
 0x231   : > { %v767_v57 = vpop.xlane.xlu0 %766 }
 0x232   : > { %v768_v58 = vsub.f32 %v761_v41, %v767_v57  ;;  %v1243_v41 = vld [vmem:[#allocation10] sm:$0xff] }
 0x233   : > { %963 = vmatpush.bf16.msra.mxu3 %v1243_v41 }
 0x234   : > { %v769_v59 = vmul.f32 1.442695, %v768_v58 }
 0x236   : > { %1357 = vpow2.f32 %v769_v59 }
 0x23c   : > { %v1358_v60 = vpop.eup %1357 }
 0x23d   : > { %v771_v61 = vsel %vm685_vm2, %v1358_v60, 0.0 }
 0x23e   : > { %772 = vadd.xlane.f32.xlu0 %v771_v61 }
 0x240   : > { %v713_v62 = vpop.xlane.xlu1 %712 }
 0x241   : > { %1359 = vrcp.f32 %v713_v62  ;;  %v894_v63 = vpop.xlane.xlu2 %893 }
 0x242   : > { %v895_v0 = vsub.f32 %v888_v50, %v894_v63 }
 0x244   : > { %v896_v1 = vmul.f32 1.442695, %v895_v0 }
 0x246   : > { %1361 = vpow2.f32 %v896_v1 }
 0x247   : > { %v1360_v2 = vpop.eup %1359 }
 0x248   : > { %v715_v3 = vmul.f32 %v1360_v2, %v1356_v49 }
 0x249   : > { %v832_v4 = vpop.xlane.xlu2 %831 }
 0x24a   : > { %v833_v6 = vsub.f32 %v826_v45, %v832_v4  ;;  %v716_v7 = vpack.c.bf16 %v715_v3, %v715_v3 }
 0x24c   : > { %v1362_v8 = vpop.eup %1361  ;;  %v834_v9 = vmul.f32 1.442695, %v833_v6  ;;  %1219 = vmatmul.msk.bf16.vlgmr.msrb.gmra.mxu0 %vm685_vm2, %v716_v7 }
 0x24d   : > { %v898_v10 = vsel %vm685_vm2, %v1362_v8, 0.0 }
 0x24e   : > { %1363 = vpow2.f32 %v834_v9  ;;  %899 = vadd.xlane.f32.xlu0 %v898_v10  ;;  %v1353_v10 = vld [vmem:[#allocation13] ss:$0 sm:$0xff] }
 0x251   : > { %v781_v11 = vpop.permute.xlu2 %780 }
 0x252   : > { %v786_v12 = vsel %vm720_vm3, %v781_v11, 0 }
 0x253   : > { %795 = vmatpush.bf16.msrb.mxu2 %v786_v12  ;;  %v1354_v12 = vld [vmem:[#allocation15] ss:$0 sm:$0xff] }
 0x254   : > { %v1364_v13 = vpop.eup %1363 }
 0x255   : > { %v836_v14 = vsel %vm685_vm2, %v1364_v13, 0.0 }
 0x256   : > { %837 = vadd.xlane.f32.xlu1 %v836_v14 }
 0x262   : > { %904 = vrot.lane.b32.xlu0 %v779_v56, %s1636_s17 }
 0x26f   : > { %842 = vrot.lane.b32.xlu1 %v779_v56, %s1634_s13 }
 0x2b1   : > { %v773_v15 = vpop.xlane.xlu0 %772 }
 0x2b2   : > { %1365 = vrcp.f32 %v773_v15 }
 0x2b8   : > { %v1366_v16 = vpop.eup %1365 }
 0x2b9   : > { %v775_v17 = vmul.f32 %v1366_v16, %v1358_v60 }
 0x2bb   : > { %v776_v18 = vpack.c.bf16 %v775_v17, %v775_v17 }
 0x2bd   : > { %1221 = vmatmul.msk.bf16.vlgmr.msrb.gmra.mxu2 %vm685_vm2, %v776_v18 }
 0x2c1   : > { %v900_v19 = vpop.xlane.xlu0 %899 }
 0x2c2   : > { %1367 = vrcp.f32 %v900_v19 }
 0x2c8   : > { %v1368_v21 = vpop.eup %1367 }
 0x2c9   : > { %v733_v20 = vpop.f32.mrf.mxu0  ;;  %v902_v23 = vmul.f32 %v1368_v21, %v1362_v8  ;;  %v838_v24 = vpop.xlane.xlu1 %837 }
 0x2ca   : > { %737 = vst.msk [vmem:[#allocation4] sm:$0xff] %vm685_vm2, %v733_v20  ;;  %1369 = vrcp.f32 %v838_v24 }
 0x2cb   : > { %v903_v27 = vpack.c.bf16 %v902_v23, %v902_v23  ;;  %1371 = vrcp.f32 %v1640_v53 }
 0x2d0   : > { %v1370_v28 = vpop.eup %1369 }
 0x2d1   : > { %v735_v22 = vpop.f32.mrf.mxu0  ;;  %v840_v29 = vmul.f32 %v1370_v28, %v1364_v13  ;;  %v1372_v54 = vpop.eup %1371 }
 0x2d2   : > { %v977_v55 = vmul.f32 32.0, %v1372_v54  ;;  %vm981_vm7 = vweird.f32 %v1372_v54 }
 0x2d3   : > { %v841_v32 = vpack.c.bf16 %v840_v29, %v840_v29 }
 0x2d4   : > { %v905_v25 = vpop.permute.xlu0 %904  ;;  %v978_v56 = vsub.f32 1.0, %v977_v55 }
 0x2d5   : > { %v910_v26 = vsel %vm720_vm3, %v905_v25, 0 }
 0x2d6   : > { %919 = vmatpush.bf16.msra.mxu2 %v910_v26  ;;  %v979_v57 = vmul.f32 %v1372_v54, %v978_v56 }
 0x2d8   : > { %v980_v58 = vadd.f32 %v1372_v54, %v979_v57 }
 0x2d9   : > { %1225 = vmatmul.msk.bf16.vlgmr.msra.gmra.mxu2 %vm685_vm2, %v903_v27 }
 0x2da   : > { %v982_v59 = vsel %vm981_vm7, %v1372_v54, %v980_v58 }
 0x2e1   : > { %v843_v30 = vpop.permute.xlu1 %842 }
 0x2e2   : > { %v848_v31 = vsel %vm720_vm3, %v843_v30, 0 }
 0x2e3   : > { %857 = vmatpush.bf16.msra.mxu0 %v848_v31 }
 0x2e6   : > { %1223 = vmatmul.msk.bf16.vlgmr.msra.gmra.mxu0 %vm685_vm2, %v841_v32 }
 0x340   : > { %v797_v33 = vpop.f32.mrf.mxu2 }
 0x341   : > { %802 = vrot.lane.b32.xlu2 %v797_v33, %s1637_s26 }
 0x348   : > { %v799_v34 = vpop.f32.mrf.mxu2 }
 0x35c   : > { %v921_v35 = vpop.f32.mrf.mxu2 }
 0x35d   : > { %926 = vrot.lane.b32.xlu2 %v921_v35, %s1638_s16 }
 0x363   : > { %v859_v36 = vpop.f32.mrf.mxu0 }
 0x364   : > { %864 = vrot.lane.b32.xlu0 %v859_v36, %s1639_s8  ;;  %v923_v37 = vpop.f32.mrf.mxu2 }
 0x36b   : > { %v861_v38 = vpop.f32.mrf.mxu0 }
 0x39b   : > { %v803_v39 = vpop.permute.xlu2 %802 }
 0x39c   : > { %806 = vst.msk [vmem:[#allocation4] sm:$0xff] %vm805_vm4, %v803_v39 }
 0x3b7   : > { %v927_v43 = vpop.permute.xlu2 %926 }
 0x3d6   : > { %v865_v42 = vpop.permute.xlu0 %864 }
 0x3d7   : > { %868 = vst.msk [vmem:[#allocation4] sm:$0xff] %vm867_vm5, %v865_v42 }
 0x3d8   : > { %930 = vst.msk [vmem:[#allocation4] sm:$0xff] %vm929_vm6, %v927_v43 }
 0x3df   : > { %v931_v44 = vld [vmem:[#allocation4] sm:$0xff] }
 0x3e0   : > { %v932_v45 = vpack.c.bf16 %v931_v44, %v931_v44 }
 0x3e2   : > { %1234 = vmatmul.msk.bf16.vlgmr.msra.gmra.mxu3 %vm589_vm0, %v932_v45 }
 0x465   : > { %v965_v48 = vpop.f32.mrf.mxu3 }
 0x466   : > { %v966_v49 = vadd.f32 %v1352_v46, %v965_v48 }
 0x468   : > { %v970_v50 = vadd.f32 %v969_v47, %v966_v49 }
 0x46a   : > { %v973_v51 = vsel %vm589_vm0, %v970_v50, 0.0 }
 0x46b   : > { %974 = vadd.xlane.f32.xlu1 %v973_v51 }
 0x46d   : > { %v967_v52 = vpop.f32.mrf.mxu3 }
 0x4de   : > { %v975_v60 = vpop.xlane.xlu1 %974 }
 0x4df   : > { %v983_v61 = vmul.f32 %v982_v59, %v975_v60 }
 0x4e1   : > { %v984_v62 = vsub.f32 %v970_v50, %v983_v61 }
 0x4e3   : > { %v985_v5 = vmul.f32 %v984_v62, %v984_v62 }
 0x4e5   : > { %v986_v63 = vsel %vm589_vm0, %v985_v5, 0.0 }
 0x4e6   : > { %987 = vadd.xlane.f32.xlu0 %v986_v63 }
 0x559   : > { %v988_v0 = vpop.xlane.xlu0 %987 }
 0x55a   : > { %v989_v1 = vmul.f32 %v988_v0, %v982_v59 }
 0x55c   : > { %v990_v2 = vadd.f32 1e-05, %v989_v1 }
 0x55e   : > { %1373 = vrsqrt.f32 %v990_v2  ;;  %vm997_vm9 = vweird.f32 %v990_v2 }
 0x564   : > { %v1374_v3 = vpop.eup %1373 }
 0x565   : > { %v992_v4 = vmul.f32 %v1374_v3, %v990_v2  ;;  %vm998_vm8 = vweird.f32 %v1374_v3 }
 0x566   : > { %vm999_vm10 = vmor %vm997_vm9, %vm998_vm8 }
 0x567   : > { %v993_v6 = vmul.f32 %v1374_v3, %v992_v4 }
 0x569   : > { %v994_v7 = vmul.f32 0.5, %v993_v6 }
 0x56b   : > { %v995_v8 = vsub.f32 1.5, %v994_v7 }
 0x56d   : > { %v996_v9 = vmul.f32 %v1374_v3, %v995_v8 }
 0x56f   : > { %v1000_v11 = vsel %vm999_vm10, %v1374_v3, %v996_v9 }
 0x570   : > { %v1001_v13 = vmul.f32 %v1000_v11, %v984_v62 }
 0x572   : > { %v1005_v14 = vmul.f32 %v1353_v10, %v1001_v13 }
 0x574   : > { %v1009_v15 = vadd.f32 %v1354_v12, %v1005_v14 }
 0x576   : > { %v1010_v16 = vpack.c.bf16 %v1009_v15, %v1009_v15 }
 0x578   : > { %1012 = vst.msk [vmem:[%s562_s27] sm:$0xf] %vm607_vm1, %v1010_v16 }
 0x579 PF: > { %s26_s23 = sadd.s32 1, %s1623_s23   ;;  %s1905_s21 = smov %s1619_s22 }
 0x57a   : > { %p23_p8 = scmp.ge.s32.totalorder %s26_s23, 4   ;;  %s1906_s22 = smov %s1908_s6 }
 0x57c   :  { %25 = sbr.rel (!%p23_p8) target bundleno = 9 (0x9), region = 134 }
 0x581   :  { %1038 = vsyncpa [#allocation6], 1 }
 0x582   :  { %1040 = vsyncpa [#allocation6 + $0x1], 1 }
 0x583   :  { %1041 = vsyncpa [#allocation8], 1 }
 0x584   :  { %1042 = vsyncpa [#allocation11], 1 }
 0x585   :  { %1043 = vsyncpa [#allocation14], 1 }

// kernel: _lambda_.7
= control target key start
LH: loop header
LB: loop body
LE: loop exit
PB: predicated region body
PF: predicated region fallthrough
CT: control target
= control target key end

     0   :  { %s1208_s21 = smov 0   ;;  %s1210_s22 = smov 0   ;;  %s1338_s0 = inlined_call_operand.vmem [shape: bf16[2,8,32], index: 0, kind: input, shape index: {}, may-alias: {0,1}]   ;;  %s1339_s1 = inlined_call_operand.vmem [shape: bf16[2,8,32], index: 1, kind: input, shape index: {}, may-alias: {0,1}]   ;;  %s1340_s2 = inlined_call_operand.vmem [shape: bf16[32,32], index: 2, kind: input, shape index: {}]   ;;  %s1341_s3 = inlined_call_operand.vmem [shape: f32[1,32], index: 3, kind: input, shape index: {}]   ;;  %s1342_s4 = inlined_call_operand.vmem [shape: bf16[32,32], index: 4, kind: input, shape index: {}]   ;;  %s1343_s5 = inlined_call_operand.vmem [shape: f32[1,32], index: 5, kind: input, shape index: {}]   ;;  %s1344_s6 = inlined_call_operand.vmem [shape: bf16[32,32], index: 6, kind: input, shape index: {}]   ;;  %s1345_s7 = inlined_call_operand.vmem [shape: f32[1,32], index: 7, kind: input, shape index: {}]   ;;  %s1346_s8 = inlined_call_operand.vmem [shape: bf16[32,32], index: 8, kind: input, shape index: {}]   ;;  %s1347_s9 = inlined_call_operand.vmem [shape: f32[1,32], index: 9, kind: input, shape index: {}]   ;;  %s1348_s10 = inlined_call_operand.vmem [shape: f32[1,32], index: 10, kind: input, shape index: {}]   ;;  %s1349_s11 = inlined_call_operand.vmem [shape: f32[1,32], index: 11, kind: input, shape index: {}]   ;;  %s1350_s12 = inlined_call_operand.vmem [shape: bf16[2,8,32], index: 12, kind: output, shape index: {}]  }
   0x1   :  { %s1212_s23 = smov 0  }
   0x2 LB: > { %s34_s24 = sadd.s32 1, %s1130_s22  ;;  %p997_p0 = scmp.ge.s32.totalorder %s1134_s23, 1  ;;  %s1134_s23 = sphi %s1212_s23, %s22_s23   ;;  %s1130_s22 = sphi %s1210_s22, %s1352_s22   ;;  %s1126_s21 = sphi %s1208_s21, %s1351_s21  }
   0x3   : > { %p36_p1 = scmp.ge.s32.totalorder %s34_s24, 2  ;;  %p389_p2 = scmp.lt.s32.totalorder %s1134_s23, 3 }
   0x5   : > { %s1354_s24 = smov (%p36_p1, %s34_s24), 0  ;;  %p390_p3 = pnand %p997_p0, %p389_p2 }
   0x6   : > { %p439_p4 = scmp.lt.s32.totalorder (!%p390_p3), %s1126_s21, 1  ;;  %s1136_s29 = smov (!%p390_p3), 112  }
   0x7   : > { %393 = sbr.rel (%p390_p3) target bundleno = 1367 (0x557), region = 68  ;;  %s1137_s30 = smov (!%p390_p3), 120  }
   0x8   : > { %s1138_s13 = smov (!%p390_p3), 104   ;;  %s1141_s26 = smov (!%p390_p3), 16  }
   0xc   : > { %v1048_v0 = vld [vmem:[%s1342_s4 + $0x8] sm:$0xff]  ;;  %v1047_v2 = vld [vmem:[%s1342_s4] sm:$0xff]  ;;  %s1356_s21 = smov (!%p439_p4, %s1126_s21), 1  ;;  %vm483_vm0 = vcmask 261120   ;;  %vm501_vm1 = vcmask 257024   ;;  %vm579_vm2 = vcmask 64512  }
   0xd   : > { %v1052_v1 = vld [vmem:[%s1340_s2 + $0x8] sm:$0xff]  ;;  %493 = vmatpush.bf16.msra.mxu0 %v1048_v0  ;;  %v1051_v3 = vld [vmem:[%s1340_s2] sm:$0xff]  ;;  %s1238_s15 = sshll.u32 %s1356_s21, 2  ;;  %vm614_vm3 = vcmask 1043456   ;;  %s1140_s21 = smov 24   ;;  %vm699_vm4 = vcmask 130112  }
   0xe   : > { %569 = vmatpush.bf16.msra.mxu2 %v1052_v1  ;;  %s449_s18 = scalar_lea.vmem %s1339_s1, %s1238_s15  ;;  %s445_s25 = scalar_lea.vmem %s1338_s0, %s1238_s15  ;;  %v1086_v6 = vld [vmem:[%s1343_s5] ss:$0 sm:$0xff]  ;;  %v1050_v20 = vld [vmem:[%s1344_s6 + $0x8] sm:$0xff]  ;;  %vm761_vm5 = vcmask 195712   ;;  %vm823_vm6 = vcmask 261312  }
   0xf   : > { %v462_v4 = vld [vmem:[%s449_s18] sm:$0xf]  ;;  %529 = vmatpush.bf16.msra.mxu1 %v1050_v20 }
  0x10   : > { %v1248_v5 = vld [vmem:[%s445_s25] sm:$0xf]  ;;  %s1139_s25 = smov 8  }
  0x11   : > { %494 = vmatpush.bf16.msra.mxu0 %v1047_v2  ;;  %v1087_v10 = vld [vmem:[%s1341_s3] ss:$0 sm:$0xff] }
  0x12   : > { %570 = vmatpush.bf16.msra.mxu2 %v1051_v3  ;;  %v1049_v21 = vld [vmem:[%s1344_s6] sm:$0xff] }
  0x13   : > { %530 = vmatpush.bf16.msra.mxu1 %v1049_v21  ;;  %v1088_v34 = vld [vmem:[%s1345_s7] ss:$0 sm:$0xff] }
  0x14   : > { %1009 = vmatmul.msk.bf16.vlgmr.msra.gmra.mxu0 %vm483_vm0, %v462_v4 }
  0x15   : > { %1027 = vmatmul.msk.bf16.vlgmr.msra.gmra.mxu2 %vm483_vm0, %v1248_v5 }
  0x16   : > { %1018 = vmatmul.msk.bf16.vlgmr.msra.gmra.mxu1 %vm483_vm0, %v462_v4 }
  0x91   : > { %v496_v7 = vpop.f32.mrf.mxu0 }
  0x92   : > { %v497_v8 = vadd.f32 %v1086_v6, %v496_v7 }
  0x93   : > { %v532_v35 = vpop.f32.mrf.mxu1 }
  0x94   : > { %v500_v9 = vpack.c.bf16 %v497_v8, %v497_v8  ;;  %v533_v36 = vadd.f32 %v1088_v34, %v532_v35 }
  0x96   : > { %502 = vst.msk [vmem:[#allocation2] sm:$0xf] %vm501_vm1, %v500_v9  ;;  %v536_v37 = vpack.c.bf16 %v533_v36, %v533_v36 }
  0x98   : > { %v572_v11 = vpop.f32.mrf.mxu2  ;;  %537 = vst.msk [vmem:[#allocation3] sm:$0xf] %vm501_vm1, %v536_v37 }
  0x99   : > { %v573_v12 = vadd.f32 %v1087_v10, %v572_v11  ;;  %v498_v13 = vpop.f32.mrf.mxu0 }
  0x9b   : > { %v578_v14 = vpack.c.bf16 %v573_v12, %v573_v12  ;;  %v534_v38 = vpop.f32.mrf.mxu1 }
  0x9d   : > { %701 = vrot.lane.b32.xlu2 %v578_v14, %s1136_s29  ;;  %v576_v15 = vld [vmem:[#allocation2] sm:$0xf] }
  0x9e   : > { %v584_v16 = vsel %vm579_vm2, %v576_v15, 0  ;;  %v636_v17 = vunpack.c.l.b16 %v576_v15 }
  0x9f   : > { %593 = vmatpush.bf16.xpose.msra.mxu3 %v584_v16  ;;  %v577_v39 = vld [vmem:[#allocation3] sm:$0xf] }
  0xa0   : > { %v574_v18 = vpop.f32.mrf.mxu2  ;;  %v637_v19 = vpack.c.b16 %v636_v17, %v636_v17  ;;  %v616_v40 = vsel %vm614_vm3, %v577_v39, 0  ;;  %v672_v55 = vunpack.c.l.b16 %v577_v39 }
  0xa1   : > { %625 = vmatpush.bf16.msrb.mxu0 %v616_v40  ;;  %v1054_v40 = vld [vmem:[%s1346_s8 + $0x8] sm:$0xff] }
  0xa2   : > { %703 = vrot.lane.b32.xlu1 %v637_v19, %s1136_s29  ;;  %638 = vrot.lane.b32.xlu0 %v637_v19, %s1137_s30  ;;  %v673_v56 = vpack.c.b16 %v672_v55, %v672_v55 }
  0xa5   : > { %763 = vrot.lane.b32.xlu2 %v578_v14, %s1138_s13 }
  0xa6   : > { %1028 = vmatmul.msk.bf16.vlgmr.msra.gmra.mxu3 %vm579_vm2, %v578_v14 }
  0xaa   : > { %765 = vrot.lane.b32.xlu1 %v637_v19, %s1138_s13  ;;  %633 = vrot.lane.b32.xlu0 %v578_v14, %s1137_s30 }
  0xf7   : > { %v702_v26 = vpop.permute.xlu2 %701 }
  0xff   : > { %v764_v32 = vpop.permute.xlu2 %763 }
 0x114   : > { %v704_v22 = vpop.permute.xlu1 %703  ;;  %v639_v23 = vpop.permute.xlu0 %638 }
 0x115   : > { %v644_v24 = vsel %vm579_vm2, %v639_v23, 0  ;;  %v709_v25 = vsel %vm579_vm2, %v704_v22, 0 }
 0x116   : > { %653 = vmatpush.bf16.xpose.msrb.mxu1 %v644_v24  ;;  %718 = vmatpush.bf16.xpose.msrb.mxu3 %v709_v25 }
 0x11c   : > { %v766_v27 = vpop.permute.xlu1 %765  ;;  %v634_v28 = vpop.permute.xlu0 %633 }
 0x11d   : > { %v771_v29 = vsel %vm579_vm2, %v766_v27, 0  ;;  %1030 = vmatmul.msk.bf16.vlgmr.msrb.gmra.mxu1 %vm579_vm2, %v634_v28  ;;  %1032 = vmatmul.msk.bf16.vlgmr.msrb.gmra.mxu3 %vm579_vm2, %v702_v26 }
 0x11e   : > { %780 = vmatpush.bf16.xpose.msra.mxu1 %v771_v29  ;;  %856 = vmatpush.bf16.msra.mxu3 %v1054_v40 }
 0x129   : > { %v595_v30 = vpop.f32.mrf.mxu3 }
 0x12a   : > { %v599_v31 = vsel %vm579_vm2, %v595_v30, -inf }
 0x12b   : > { %600 = vmax.xlane.f32.xlu1 %v599_v31 }
 0x12d   : > { %1034 = vmatmul.msk.bf16.vlgmr.msra.gmra.mxu1 %vm579_vm2, %v764_v32 }
 0x131   : > { %v597_v33 = vpop.f32.mrf.mxu3 }
 0x19a   : > { %v655_v41 = vpop.f32.mrf.mxu1 }
 0x19b   : > { %v659_v42 = vsel %vm579_vm2, %v655_v41, -inf }
 0x19c   : > { %660 = vmax.xlane.f32.xlu0 %v659_v42 }
 0x19e   : > { %v601_v43 = vpop.xlane.xlu1 %600 }
 0x19f   : > { %v602_v44 = vsub.f32 %v595_v30, %v601_v43 }
 0x1a0   : > { %v720_v45 = vpop.f32.mrf.mxu3 }
 0x1a1   : > { %v603_v46 = vmul.f32 1.442695, %v602_v44  ;;  %v724_v54 = vsel %vm579_vm2, %v720_v45, -inf }
 0x1a2   : > { %v657_v47 = vpop.f32.mrf.mxu1 }
 0x1a3   : > { %1092 = vpow2.f32 %v603_v46  ;;  %v1089_v46 = vld [vmem:[%s1347_s9] ss:$0 sm:$0xff]  ;;  %v863_v47 = vunpack.c.l.bf16 %v1248_v5 }
 0x1a8   : > { %v722_v48 = vpop.f32.mrf.mxu3 }
 0x1a9   : > { %v1093_v49 = vpop.eup %1092 }
 0x1aa   : > { %v782_v50 = vpop.f32.mrf.mxu1  ;;  %v605_v51 = vsel %vm579_vm2, %v1093_v49, 0.0 }
 0x1ab   : > { %606 = vadd.xlane.f32.xlu1 %v605_v51  ;;  %v786_v52 = vsel %vm579_vm2, %v782_v50, -inf }
 0x1ac   : > { %787 = vmax.xlane.f32.xlu2 %v786_v52 }
 0x1b2   : > { %v784_v53 = vpop.f32.mrf.mxu1 }
 0x1b3   : > { %v1142_v53 = vmov 32.0  }
 0x1b4   : > { %725 = vmax.xlane.f32.xlu2 %v724_v54 }
 0x1cc   : > { %674 = vrot.lane.b32.xlu2 %v673_v56, %s1137_s30 }
 0x20f   : > { %v661_v57 = vpop.xlane.xlu0 %660 }
 0x210   : > { %v662_v58 = vsub.f32 %v655_v41, %v661_v57  ;;  %v1053_v41 = vld [vmem:[%s1346_s8] sm:$0xff] }
 0x211   : > { %857 = vmatpush.bf16.msra.mxu3 %v1053_v41 }
 0x212   : > { %v663_v59 = vmul.f32 1.442695, %v662_v58 }
 0x214   : > { %1094 = vpow2.f32 %v663_v59 }
 0x21a   : > { %v1095_v60 = vpop.eup %1094 }
 0x21b   : > { %v665_v61 = vsel %vm579_vm2, %v1095_v60, 0.0 }
 0x21c   : > { %666 = vadd.xlane.f32.xlu0 %v665_v61 }
 0x21e   : > { %v607_v62 = vpop.xlane.xlu1 %606 }
 0x21f   : > { %1096 = vrcp.f32 %v607_v62  ;;  %v788_v63 = vpop.xlane.xlu2 %787 }
 0x220   : > { %v789_v0 = vsub.f32 %v782_v50, %v788_v63 }
 0x222   : > { %v790_v1 = vmul.f32 1.442695, %v789_v0 }
 0x224   : > { %1098 = vpow2.f32 %v790_v1 }
 0x225   : > { %v1097_v2 = vpop.eup %1096 }
 0x226   : > { %v609_v3 = vmul.f32 %v1097_v2, %v1093_v49 }
 0x227   : > { %v726_v4 = vpop.xlane.xlu2 %725 }
 0x228   : > { %v727_v6 = vsub.f32 %v720_v45, %v726_v4  ;;  %v610_v7 = vpack.c.bf16 %v609_v3, %v609_v3 }
 0x22a   : > { %v1099_v8 = vpop.eup %1098  ;;  %v728_v9 = vmul.f32 1.442695, %v727_v6  ;;  %1029 = vmatmul.msk.bf16.vlgmr.msrb.gmra.mxu0 %vm579_vm2, %v610_v7 }
 0x22b   : > { %v792_v10 = vsel %vm579_vm2, %v1099_v8, 0.0 }
 0x22c   : > { %1100 = vpow2.f32 %v728_v9  ;;  %793 = vadd.xlane.f32.xlu0 %v792_v10  ;;  %v1090_v10 = vld [vmem:[%s1348_s10] ss:$0 sm:$0xff] }
 0x22f   : > { %v675_v11 = vpop.permute.xlu2 %674 }
 0x230   : > { %v680_v12 = vsel %vm614_vm3, %v675_v11, 0 }
 0x231   : > { %689 = vmatpush.bf16.msrb.mxu2 %v680_v12  ;;  %v1091_v12 = vld [vmem:[%s1349_s11] ss:$0 sm:$0xff] }
 0x232   : > { %v1101_v13 = vpop.eup %1100 }
 0x233   : > { %v730_v14 = vsel %vm579_vm2, %v1101_v13, 0.0 }
 0x234   : > { %731 = vadd.xlane.f32.xlu1 %v730_v14 }
 0x240   : > { %798 = vrot.lane.b32.xlu0 %v673_v56, %s1138_s13 }
 0x24d   : > { %736 = vrot.lane.b32.xlu1 %v673_v56, %s1136_s29 }
 0x28f   : > { %v667_v15 = vpop.xlane.xlu0 %666 }
 0x290   : > { %1102 = vrcp.f32 %v667_v15 }
 0x296   : > { %v1103_v16 = vpop.eup %1102 }
 0x297   : > { %v669_v17 = vmul.f32 %v1103_v16, %v1095_v60 }
 0x299   : > { %v670_v18 = vpack.c.bf16 %v669_v17, %v669_v17 }
 0x29b   : > { %1031 = vmatmul.msk.bf16.vlgmr.msrb.gmra.mxu2 %vm579_vm2, %v670_v18 }
 0x29f   : > { %v794_v19 = vpop.xlane.xlu0 %793 }
 0x2a0   : > { %1104 = vrcp.f32 %v794_v19 }
 0x2a6   : > { %v1105_v21 = vpop.eup %1104 }
 0x2a7   : > { %v627_v20 = vpop.f32.mrf.mxu0  ;;  %v796_v23 = vmul.f32 %v1105_v21, %v1099_v8  ;;  %v732_v24 = vpop.xlane.xlu1 %731 }
 0x2a8   : > { %631 = vst.msk [vmem:[#allocation4] sm:$0xff] %vm579_vm2, %v627_v20  ;;  %1106 = vrcp.f32 %v732_v24 }
 0x2a9   : > { %v797_v27 = vpack.c.bf16 %v796_v23, %v796_v23  ;;  %1108 = vrcp.f32 %v1142_v53 }
 0x2ae   : > { %v1107_v28 = vpop.eup %1106 }
 0x2af   : > { %v629_v22 = vpop.f32.mrf.mxu0  ;;  %v734_v29 = vmul.f32 %v1107_v28, %v1101_v13  ;;  %v1109_v54 = vpop.eup %1108 }
 0x2b0   : > { %v871_v55 = vmul.f32 32.0, %v1109_v54  ;;  %vm875_vm7 = vweird.f32 %v1109_v54 }
 0x2b1   : > { %v735_v32 = vpack.c.bf16 %v734_v29, %v734_v29 }
 0x2b2   : > { %v799_v25 = vpop.permute.xlu0 %798  ;;  %v872_v56 = vsub.f32 1.0, %v871_v55 }
 0x2b3   : > { %v804_v26 = vsel %vm614_vm3, %v799_v25, 0 }
 0x2b4   : > { %813 = vmatpush.bf16.msra.mxu2 %v804_v26  ;;  %v873_v57 = vmul.f32 %v1109_v54, %v872_v56 }
 0x2b6   : > { %v874_v58 = vadd.f32 %v1109_v54, %v873_v57 }
 0x2b7   : > { %1035 = vmatmul.msk.bf16.vlgmr.msra.gmra.mxu2 %vm579_vm2, %v797_v27 }
 0x2b8   : > { %v876_v59 = vsel %vm875_vm7, %v1109_v54, %v874_v58 }
 0x2bf   : > { %v737_v30 = vpop.permute.xlu1 %736 }
 0x2c0   : > { %v742_v31 = vsel %vm614_vm3, %v737_v30, 0 }
 0x2c1   : > { %751 = vmatpush.bf16.msra.mxu0 %v742_v31 }
 0x2c4   : > { %1033 = vmatmul.msk.bf16.vlgmr.msra.gmra.mxu0 %vm579_vm2, %v735_v32 }
 0x31e   : > { %v691_v33 = vpop.f32.mrf.mxu2 }
 0x31f   : > { %696 = vrot.lane.b32.xlu2 %v691_v33, %s1139_s25 }
 0x326   : > { %v693_v34 = vpop.f32.mrf.mxu2 }
 0x33a   : > { %v815_v35 = vpop.f32.mrf.mxu2 }
 0x33b   : > { %820 = vrot.lane.b32.xlu2 %v815_v35, %s1140_s21  ;;  %s456_s21 = scalar_lea.vmem %s1350_s12, %s1238_s15 }
 0x341   : > { %v753_v36 = vpop.f32.mrf.mxu0 }
 0x342   : > { %758 = vrot.lane.b32.xlu0 %v753_v36, %s1141_s26  ;;  %v817_v37 = vpop.f32.mrf.mxu2 }
 0x349   : > { %v755_v38 = vpop.f32.mrf.mxu0 }
 0x379   : > { %v697_v39 = vpop.permute.xlu2 %696 }
 0x37a   : > { %700 = vst.msk [vmem:[#allocation4] sm:$0xff] %vm699_vm4, %v697_v39 }
 0x395   : > { %v821_v43 = vpop.permute.xlu2 %820 }
 0x3b4   : > { %v759_v42 = vpop.permute.xlu0 %758 }
 0x3b5   : > { %762 = vst.msk [vmem:[#allocation4] sm:$0xff] %vm761_vm5, %v759_v42 }
 0x3b6   : > { %824 = vst.msk [vmem:[#allocation4] sm:$0xff] %vm823_vm6, %v821_v43 }
 0x3bd   : > { %v825_v44 = vld [vmem:[#allocation4] sm:$0xff] }
 0x3be   : > { %v826_v45 = vpack.c.bf16 %v825_v44, %v825_v44 }
 0x3c0   : > { %1044 = vmatmul.msk.bf16.vlgmr.msra.gmra.mxu3 %vm483_vm0, %v826_v45 }
 0x443   : > { %v859_v48 = vpop.f32.mrf.mxu3 }
 0x444   : > { %v860_v49 = vadd.f32 %v1089_v46, %v859_v48 }
 0x446   : > { %v864_v50 = vadd.f32 %v863_v47, %v860_v49 }
 0x448   : > { %v867_v51 = vsel %vm483_vm0, %v864_v50, 0.0 }
 0x449   : > { %868 = vadd.xlane.f32.xlu1 %v867_v51 }
 0x44b   : > { %v861_v52 = vpop.f32.mrf.mxu3 }
 0x4bc   : > { %v869_v60 = vpop.xlane.xlu1 %868 }
 0x4bd   : > { %v877_v61 = vmul.f32 %v876_v59, %v869_v60 }
 0x4bf   : > { %v878_v62 = vsub.f32 %v864_v50, %v877_v61 }
 0x4c1   : > { %v879_v5 = vmul.f32 %v878_v62, %v878_v62 }
 0x4c3   : > { %v880_v63 = vsel %vm483_vm0, %v879_v5, 0.0 }
 0x4c4   : > { %881 = vadd.xlane.f32.xlu0 %v880_v63 }
 0x537   : > { %v882_v0 = vpop.xlane.xlu0 %881 }
 0x538   : > { %v883_v1 = vmul.f32 %v882_v0, %v876_v59 }
 0x53a   : > { %v884_v2 = vadd.f32 1e-05, %v883_v1 }
 0x53c   : > { %1110 = vrsqrt.f32 %v884_v2  ;;  %vm891_vm9 = vweird.f32 %v884_v2 }
 0x542   : > { %v1111_v3 = vpop.eup %1110 }
 0x543   : > { %v886_v4 = vmul.f32 %v1111_v3, %v884_v2  ;;  %vm892_vm8 = vweird.f32 %v1111_v3 }
 0x544   : > { %vm893_vm10 = vmor %vm891_vm9, %vm892_vm8 }
 0x545   : > { %v887_v6 = vmul.f32 %v1111_v3, %v886_v4 }
 0x547   : > { %v888_v7 = vmul.f32 0.5, %v887_v6 }
 0x549   : > { %v889_v8 = vsub.f32 1.5, %v888_v7 }
 0x54b   : > { %v890_v9 = vmul.f32 %v1111_v3, %v889_v8 }
 0x54d   : > { %v894_v11 = vsel %vm893_vm10, %v1111_v3, %v890_v9 }
 0x54e   : > { %v895_v13 = vmul.f32 %v894_v11, %v878_v62 }
 0x550   : > { %v899_v14 = vmul.f32 %v1090_v10, %v895_v13 }
 0x552   : > { %v903_v15 = vadd.f32 %v1091_v12, %v899_v14 }
 0x554   : > { %v904_v16 = vpack.c.bf16 %v903_v15, %v903_v15 }
 0x556   : > { %906 = vst.msk [vmem:[%s456_s21] sm:$0xf] %vm501_vm1, %v904_v16 }
 0x557 PF: > { %s22_s23 = sadd.s32 1, %s1134_s23   ;;  %s1351_s21 = smov %s1130_s22 }
 0x558   : > { %p19_p5 = scmp.ge.s32.totalorder %s22_s23, 4   ;;  %s1352_s22 = smov %s1354_s24 }
 0x55a   :  { %21 = sbr.rel (!%p19_p5) target bundleno = 2 (0x2), region = 105 }

// kernel: _lambda_.9
= control target key start
LH: loop header
LB: loop body
LE: loop exit
PB: predicated region body
PF: predicated region fallthrough
CT: control target
= control target key end

     0   :  { %vm20_vm0 = vcmask 261120   ;;  %v101_v5 = vmov 32.0   ;;  %s143_s0 = inlined_call_operand.vmem [shape: bf16[16,32], index: 0, kind: input, shape index: {}]   ;;  %s144_s1 = inlined_call_operand.vmem [shape: f32[1,32], index: 1, kind: input, shape index: {}]   ;;  %s145_s2 = inlined_call_operand.vmem [shape: f32[1,32], index: 2, kind: input, shape index: {}]   ;;  %s146_s3 = inlined_call_operand.vmem [shape: f32[16,32], index: 3, kind: output, shape index: {}]  }
   0x1   :  { %v89_v0 = vld [vmem:[%s143_s0] sm:$0xff]   ;;  %95 = vrcp.f32 %v101_v5 }
   0x2   :  { %v90_v1 = vunpack.c.l.bf16 %v89_v0  ;;  %v91_v3 = vunpack.c.h.bf16 %v89_v0  ;;  %v93_v36 = vld [vmem:[%s144_s1] ss:$0 sm:$0xff] }
   0x3   :  { %v94_v39 = vld [vmem:[%s145_s2] ss:$0 sm:$0xff] }
   0x4   :  { %v21_v2 = vsel %vm20_vm0, %v90_v1, 0.0  ;;  %v24_v4 = vsel %vm20_vm0, %v91_v3, 0.0 }
   0x5   :  { %22 = vadd.xlane.f32.xlu0 %v21_v2 }
   0x7   :  { %v96_v6 = vpop.eup %95 }
   0x8   :  { %v28_v7 = vmul.f32 32.0, %v96_v6  ;;  %vm32_vm1 = vweird.f32 %v96_v6 }
   0xa   :  { %v29_v8 = vsub.f32 1.0, %v28_v7 }
   0xc   :  { %v30_v9 = vmul.f32 %v96_v6, %v29_v8 }
   0xd   :  { %25 = vadd.xlane.f32.xlu0 %v24_v4 }
   0xe   :  { %v31_v10 = vadd.f32 %v96_v6, %v30_v9 }
  0x10   :  { %v33_v11 = vsel %vm32_vm1, %v96_v6, %v31_v10 }
  0x78   :  { %v23_v12 = vpop.xlane.xlu0 %22 }
  0x79   :  { %v34_v13 = vmul.f32 %v33_v11, %v23_v12 }
  0x7b   :  { %v36_v14 = vsub.f32 %v90_v1, %v34_v13 }
  0x7d   :  { %v38_v15 = vmul.f32 %v36_v14, %v36_v14 }
  0x7f   :  { %v40_v16 = vsel %vm20_vm0, %v38_v15, 0.0 }
  0x80   :  { %41 = vadd.xlane.f32.xlu1 %v40_v16  ;;  %v26_v17 = vpop.xlane.xlu0 %25 }
  0x81   :  { %v35_v18 = vmul.f32 %v33_v11, %v26_v17 }
  0x83   :  { %v37_v19 = vsub.f32 %v91_v3, %v35_v18 }
  0x85   :  { %v39_v20 = vmul.f32 %v37_v19, %v37_v19 }
  0x87   :  { %v43_v21 = vsel %vm20_vm0, %v39_v20, 0.0 }
  0x88   :  { %44 = vadd.xlane.f32.xlu1 %v43_v21 }
  0xf3   :  { %v42_v22 = vpop.xlane.xlu1 %41 }
  0xf4   :  { %v46_v23 = vmul.f32 %v42_v22, %v33_v11 }
  0xf6   :  { %v48_v24 = vadd.f32 1e-05, %v46_v23 }
  0xf8   :  { %97 = vrsqrt.f32 %v48_v24  ;;  %vm56_vm3 = vweird.f32 %v48_v24 }
  0xfb   :  { %v45_v25 = vpop.xlane.xlu1 %44 }
  0xfc   :  { %v47_v26 = vmul.f32 %v45_v25, %v33_v11 }
  0xfe   :  { %v98_v27 = vpop.eup %97  ;;  %v49_v28 = vadd.f32 1e-05, %v47_v26 }
  0xff   :  { %v51_v29 = vmul.f32 %v98_v27, %v48_v24  ;;  %vm57_vm2 = vweird.f32 %v98_v27 }
 0x100   :  { %99 = vrsqrt.f32 %v49_v28  ;;  %vm58_vm4 = vmor %vm56_vm3, %vm57_vm2  ;;  %vm66_vm6 = vweird.f32 %v49_v28 }
 0x101   :  { %v52_v30 = vmul.f32 %v98_v27, %v51_v29 }
 0x103   :  { %v53_v31 = vmul.f32 0.5, %v52_v30 }
 0x105   :  { %v54_v32 = vsub.f32 1.5, %v53_v31 }
 0x106   :  { %v100_v33 = vpop.eup %99 }
 0x107   :  { %v55_v34 = vmul.f32 %v98_v27, %v54_v32  ;;  %v61_v35 = vmul.f32 %v100_v33, %v49_v28  ;;  %vm67_vm5 = vweird.f32 %v100_v33 }
 0x108   :  { %vm68_vm7 = vmor %vm66_vm6, %vm67_vm5 }
 0x109   :  { %v59_v37 = vsel %vm58_vm4, %v98_v27, %v55_v34  ;;  %v62_v38 = vmul.f32 %v100_v33, %v61_v35 }
 0x10a   :  { %v70_v40 = vmul.f32 %v59_v37, %v36_v14 }
 0x10b   :  { %v63_v41 = vmul.f32 0.5, %v62_v38 }
 0x10c   :  { %v75_v42 = vmul.f32 %v93_v36, %v70_v40 }
 0x10d   :  { %v64_v43 = vsub.f32 1.5, %v63_v41 }
 0x10e   :  { %v80_v44 = vadd.f32 %v94_v39, %v75_v42 }
 0x10f   :  { %v65_v45 = vmul.f32 %v100_v33, %v64_v43 }
 0x110   :  { %82 = vst.msk [vmem:[%s146_s3] sm:$0xff] %vm20_vm0, %v80_v44 }
 0x111   :  { %v69_v46 = vsel %vm68_vm7, %v100_v33, %v65_v45 }
 0x112   :  { %v71_v47 = vmul.f32 %v69_v46, %v37_v19 }
 0x114   :  { %v76_v48 = vmul.f32 %v93_v36, %v71_v47 }
 0x116   :  { %v81_v49 = vadd.f32 %v94_v39, %v76_v48 }
 0x118   :  { %83 = vst.msk [vmem:[%s146_s3 + $0x8] sm:$0xff] %vm20_vm0, %v81_v49 }

</bundles_post_ra>
